<compile_context>
chip_gen: v5e
topology: v5e:2x2
jax: 0.10.0
libtpu: 0.0.40
codegen_flags: <defaults>
</compile_context>

<pallas_src>
import functools

import jax
import jax.numpy as jnp
import numpy as np
from jax.experimental import pallas as pl
from jax.experimental.pallas import tpu as pltpu


def _round_up(x, m):
    return (x + m - 1) // m * m


def _pick_d_tile(d, hw, k9, c_pad, budget_bytes, row_cap):
    """Largest divisor of `d` whose phase-1 working set fits the VMEM budget."""
    best = 1
    for td in range(1, d + 1):
        if d % td:
            continue
        rows = td * hw
        vmem = ((td + 2) * hw * k9 * 2 * 2        # bf16 input window, 2x buffered
                + rows * c_pad * 2 * 2            # bf16 conv tile out, 2x buffered
                + rows * c_pad * 4                # f32 accumulator (live values)
                + 3 * k9 * c_pad * 2 * 2)         # bf16 weights, 2x buffered
        if vmem <= budget_bytes and rows <= max(row_cap, hw):
            best = td
    return best


def _pick_group(n_tiles, tm, c_pad, budget_bytes, row_cap):
    """Largest divisor of n_tiles whose phase-2 tile fits budget / row cap."""
    best = 1
    for g in range(1, n_tiles + 1):
        if n_tiles % g:
            continue
        rows = g * tm
        vmem = rows * c_pad * (2 + 4) * 2         # bf16 in + f32 out, 2x buffered
        if vmem <= budget_bytes and rows <= max(row_cap, tm):
            best = g
    return best


def _conv_stats_kernel(x_ref, w_ref, o_ref, s_ref, q_ref, *, td, hw, k9):
    """One (TD, H, W) output panel.

    The 3 depth taps are read as static slices of the overlapping (TD+2)-plane
    VMEM window and folded with 3 accumulated MXU matmuls (K = 9*Cin already
    holds the 9 in-plane taps).  BN partial sums come from the f32 accumulator
    before the bf16 downcast of the conv writeback.
    """
    acc = jnp.zeros((td * hw, o_ref.shape[-1]), jnp.float32)
    for kd in range(3):                                        # static unroll
        lhs = x_ref[pl.ds(kd, td), :, :].reshape(td * hw, k9)  # (TM, K9) bf16
        acc += jnp.dot(lhs, w_ref[kd], preferred_element_type=jnp.float32)
    o_ref[...] = acc.astype(o_ref.dtype)                       # bf16 writeback
    s_ref[...] = jnp.sum(acc, axis=0, keepdims=True)           # (1, C_pad) f32
    q_ref[...] = jnp.sum(acc * acc, axis=0, keepdims=True)


def _bn_relu_kernel(x_ref, scale_ref, shift_ref, o_ref):
    """Fused BatchNorm apply (precomputed scale/shift) + ReLU on one row group."""
    y = x_ref[...].astype(jnp.float32) * scale_ref[...] + shift_ref[...]
    o_ref[...] = jnp.maximum(y, 0.0).astype(o_ref.dtype)


def conv3d_block(x_ncdhw, weight, gamma, beta, eps=1e-5):
    """Conv3d(k=3, s=1, p=1, bias=False) + BatchNorm3d (batch stats) + ReLU."""
    N, Cin, D, H, W = x_ncdhw.shape
    Cout = weight.shape[0]
    HW = H * W
    M = N * D * HW
    K9 = 9 * Cin
    C_pad = _round_up(Cout, 128)          # lane-dense output dim

    # ---------------- layout glue (XLA), all in bf16 from the start ----------------
    # Cast before any tap expansion so slices / concat / pad move bf16, not f32.
    x = jnp.transpose(x_ncdhw.astype(jnp.bfloat16), (0, 2, 3, 4, 1))     # NDHWC
    xp = jnp.pad(x, ((0, 0), (1, 1), (1, 1), (1, 1), (0, 0)))            # halo pad
    # Fold only the 9 in-plane (kh, kw) taps into the contraction dim.
    taps = [xp[:, :, kh:kh + H, kw:kw + W, :]
            for kh in range(3) for kw in range(3)]
    x9 = jnp.concatenate(taps, axis=-1).reshape(N, D + 2, HW, K9)

    vmem_budget = 16 * 1024 * 1024        # working-set target, safe for v7x 64 MiB
    TD = _pick_d_tile(D, HW, K9, C_pad, vmem_budget, row_cap=2048)
    ND = D // TD
    TM = TD * HW                          # rows per conv tile
    n_tiles = N * ND

    # Overlapping depth windows: TD+2 planes per tile so the kernel sees all three
    # kd taps from a single pipelined slab DMA (only 2 halo planes extra per tile).
    wins = jnp.stack([x9[:, t * TD:t * TD + TD + 2] for t in range(ND)], axis=1)
    xw = wins.reshape(n_tiles, TD + 2, HW, K9)

    # PyTorch Conv3d weight (Cout, Cin, kd, kh, kw) -> (kd, 9*Cin, C_pad) bf16,
    # matching the (kh, kw, c) packing of x9's contraction dim.
    w9 = jnp.transpose(weight, (2, 3, 4, 1, 0)).reshape(3, K9, Cout)
    w9 = jnp.pad(w9, ((0, 0), (0, 0), (0, C_pad - Cout))).astype(jnp.bfloat16)

    cparams = pltpu.CompilerParams(
        dimension_semantics=("parallel",),        # tiles independent -> megacore
        vmem_limit_bytes=32 * 1024 * 1024,        # within v7x's 64 MiB physical VMEM
    )

    conv_cost = pl.CostEstimate(
        flops=2 * M * 3 * K9 * C_pad,
        transcendentals=0,
        bytes_accessed=int(xw.size) * 2 + int(w9.size) * 2
        + n_tiles * TM * C_pad * 2 + 2 * n_tiles * C_pad * 4,
    )

    # -------- phase 1: conv per panel + per-tile partial BN statistics --------
    conv_bf16, psum, psq = pl.pallas_call(
        functools.partial(_conv_stats_kernel, td=TD, hw=HW, k9=K9),
        out_shape=(
            jax.ShapeDtypeStruct((n_tiles, TM, C_pad), jnp.bfloat16),
            jax.ShapeDtypeStruct((n_tiles, 1, C_pad), jnp.float32),
            jax.ShapeDtypeStruct((n_tiles, 1, C_pad), jnp.float32),
        ),
        grid=(n_tiles,),
        in_specs=[
            pl.BlockSpec((None, TD + 2, HW, K9), lambda i: (i, 0, 0, 0)),
            # Constant-index, small (3*K9*C_pad bf16) weight block.
            pl.BlockSpec((3, K9, C_pad), lambda i: (0, 0, 0)),
        ],
        out_specs=(
            pl.BlockSpec((None, TM, C_pad), lambda i: (i, 0, 0)),
            pl.BlockSpec((None, 1, C_pad), lambda i: (i, 0, 0)),
            pl.BlockSpec((None, 1, C_pad), lambda i: (i, 0, 0)),
        ),
        compiler_params=cparams,
        cost_estimate=conv_cost,
    )(xw, w9)

    # ------- tiny O(n_tiles*Cout) stats fold + per-channel scale/shift (JAX) -------
    ssum = jnp.sum(psum[:, 0, :], axis=0)                      # (C_pad,)
    ssq = jnp.sum(psq[:, 0, :], axis=0)
    mean = ssum / M
    # TODO(synk): single-pass E[x^2]-E[x]^2 in f32; switch to a centered/Welford
    # fold of the per-tile partials if |mean| >> std channels appear at huge M.
    var = jnp.maximum(ssq / M - mean * mean, 0.0)
    g = jnp.pad(gamma.astype(jnp.float32), (0, C_pad - Cout), constant_values=1.0)
    b = jnp.pad(beta.astype(jnp.float32), (0, C_pad - Cout))
    inv_std = jax.lax.rsqrt(var + eps)
    scale = (g * inv_std).reshape(1, 1, C_pad)
    shift = (b - mean * (g * inv_std)).reshape(1, 1, C_pad)

    # -------- phase 2: BN apply + ReLU (pure FMA, larger grouped row tiles) --------
    G = _pick_group(n_tiles, TM, C_pad, vmem_budget, row_cap=4096)
    bn_cost = pl.CostEstimate(
        flops=3 * n_tiles * TM * C_pad,
        transcendentals=0,
        bytes_accessed=n_tiles * TM * C_pad * (2 + 4),
    )
    out3 = pl.pallas_call(
        _bn_relu_kernel,
        out_shape=jax.ShapeDtypeStruct((n_tiles, TM, C_pad), x_ncdhw.dtype),
        grid=(n_tiles // G,),
        in_specs=[
            pl.BlockSpec((G, TM, C_pad), lambda i: (i, 0, 0)),
            pl.BlockSpec((1, 1, C_pad), lambda i: (0, 0, 0)),
            pl.BlockSpec((1, 1, C_pad), lambda i: (0, 0, 0)),
        ],
        out_specs=pl.BlockSpec((G, TM, C_pad), lambda i: (i, 0, 0)),
        compiler_params=cparams,
        cost_estimate=bn_cost,
    )(conv_bf16, scale, shift)

    # TODO(synk): returning NDHWC (or fusing this relayout into the consumer) would
    # save one full HBM read+write; NCDHW kept to match the PyTorch module output.
    out = out3.reshape(N, D, H, W, C_pad)[..., :Cout]
    return jnp.transpose(out, (0, 4, 1, 2, 3))


def _reference(x, weight, gamma, beta, eps=1e-5):
    """Pure-JAX f32 reference of the PyTorch forward (train-mode BatchNorm)."""
    out = jax.lax.conv_general_dilated(
        x, weight, window_strides=(1, 1, 1), padding=((1, 1),) * 3,
        dimension_numbers=("NCDHW", "OIDHW", "NCDHW"))
    mean = jnp.mean(out, axis=(0, 2, 3, 4), keepdims=True)
    var = jnp.mean((out - mean) ** 2, axis=(0, 2, 3, 4), keepdims=True)
    y = (out - mean) * jax.lax.rsqrt(var + eps)
    y = y * gamma.reshape(1, -1, 1, 1, 1) + beta.reshape(1, -1, 1, 1, 1)
    return jnp.maximum(y, 0.0)


if __name__ == "__main__":
    key = jax.random.PRNGKey(0)
    kx, kw = jax.random.split(key)

    N, Cin, Cout, D, H, W = 2, 4, 8, 8, 8, 8
    x = jax.random.normal(kx, (N, Cin, D, H, W), dtype=jnp.float32)
    # Deterministic kaiming-like init for the conv weight (Cout, Cin, 3, 3, 3).
    weight = jax.random.normal(kw, (Cout, Cin, 3, 3, 3), dtype=jnp.float32)
    weight = weight * np.sqrt(2.0 / (Cin * 27)).astype(np.float32)
    gamma = jnp.ones((Cout,), jnp.float32)   # BatchNorm3d default affine init
    beta = jnp.zeros((Cout,), jnp.float32)

    out = jax.block_until_ready(jax.jit(conv3d_block)(x, weight, gamma, beta))
    ref = jax.block_until_ready(_reference(x, weight, gamma, beta))

    assert out.shape == (N, Cout, D, H, W)
    # bf16 MXU path + bf16 intermediate vs f32 reference -> bf16-level tolerance.
    np.testing.assert_allclose(np.asarray(out), np.asarray(ref),
                               rtol=2e-2, atol=2e-2)
    print("KERNEL_OK")
</pallas_src>

<mosaic_0001>
module attributes {stable_mosaic.version = 11 : i64} {
  func.func @_conv_stats_kernel(%arg0: i32, %arg1: memref<1x10x64x36xbf16, #tpu.memory_space<vmem>>, %arg2: memref<3x36x128xbf16, #tpu.memory_space<vmem>>, %arg3: memref<1x512x128xbf16, #tpu.memory_space<vmem>>, %arg4: memref<1x1x128xf32, #tpu.memory_space<vmem>>, %arg5: memref<1x1x128xf32, #tpu.memory_space<vmem>>) attributes {dimension_semantics = [#tpu.dimension_semantics<parallel>], iteration_bounds = array<i64: 2>, scalar_prefetch = 0 : i64, scratch_operands = 0 : i64, tpu.core_type = #tpu.core_type<tc>, window_params = [{transform_indices = @transform_0, window_bounds = array<i64: 1, 10, 64, 36>}, {pipeline_mode = #tpu.pipeline_mode<synchronous>, transform_indices = @transform_1, window_bounds = array<i64: 3, 36, 128>}, {transform_indices = @transform_2, window_bounds = array<i64: 1, 512, 128>}, {transform_indices = @transform_3, window_bounds = array<i64: 1, 1, 128>}, {transform_indices = @transform_4, window_bounds = array<i64: 1, 1, 128>}]} {
    %cst = arith.constant 0.000000e+00 : f32
    %0 = vector.broadcast %cst : f32 to vector<512x128xf32>
    %c0 = arith.constant 0 : index
    %c0_0 = arith.constant 0 : index
    %c0_1 = arith.constant 0 : index
    %c0_2 = arith.constant 0 : index
    %1 = vector.load %arg1[%c0, %c0_0, %c0_1, %c0_2] : memref<1x10x64x36xbf16, #tpu.memory_space<vmem>>, vector<1x8x64x36xbf16>
    %2 = vector.shape_cast %1 : vector<1x8x64x36xbf16> to vector<8x64x36xbf16>
    %3 = vector.shape_cast %2 : vector<8x64x36xbf16> to vector<512x36xbf16>
    %c0_3 = arith.constant 0 : index
    %c0_4 = arith.constant 0 : index
    %c0_5 = arith.constant 0 : index
    %4 = vector.load %arg2[%c0_3, %c0_4, %c0_5] : memref<3x36x128xbf16, #tpu.memory_space<vmem>>, vector<1x36x128xbf16>
    %5 = vector.shape_cast %4 : vector<1x36x128xbf16> to vector<36x128xbf16>
    %cst_6 = arith.constant dense<0.000000e+00> : vector<512x128xf32>
    %6 = tpu.matmul %3, %5, %cst_6 {dimension_numbers = #tpu.dot_dimension_numbers<[1], [0], [0], [1], [0, 0, 1, 1], [], []>} : vector<512x36xbf16>, vector<36x128xbf16>, vector<512x128xf32> -> vector<512x128xf32>
    %7 = arith.addf %0, %6 : vector<512x128xf32>
    %c0_7 = arith.constant 0 : index
    %c1 = arith.constant 1 : index
    %c0_8 = arith.constant 0 : index
    %c0_9 = arith.constant 0 : index
    %8 = vector.load %arg1[%c0_7, %c1, %c0_8, %c0_9] : memref<1x10x64x36xbf16, #tpu.memory_space<vmem>>, vector<1x8x64x36xbf16>
    %9 = vector.shape_cast %8 : vector<1x8x64x36xbf16> to vector<8x64x36xbf16>
    %10 = vector.shape_cast %9 : vector<8x64x36xbf16> to vector<512x36xbf16>
    %c1_10 = arith.constant 1 : index
    %c0_11 = arith.constant 0 : index
    %c0_12 = arith.constant 0 : index
    %11 = vector.load %arg2[%c1_10, %c0_11, %c0_12] : memref<3x36x128xbf16, #tpu.memory_space<vmem>>, vector<1x36x128xbf16>
    %12 = vector.shape_cast %11 : vector<1x36x128xbf16> to vector<36x128xbf16>
    %cst_13 = arith.constant dense<0.000000e+00> : vector<512x128xf32>
    %13 = tpu.matmul %10, %12, %cst_13 {dimension_numbers = #tpu.dot_dimension_numbers<[1], [0], [0], [1], [0, 0, 1, 1], [], []>} : vector<512x36xbf16>, vector<36x128xbf16>, vector<512x128xf32> -> vector<512x128xf32>
    %14 = arith.addf %7, %13 : vector<512x128xf32>
    %c0_14 = arith.constant 0 : index
    %c2 = arith.constant 2 : index
    %c0_15 = arith.constant 0 : index
    %c0_16 = arith.constant 0 : index
    %15 = vector.load %arg1[%c0_14, %c2, %c0_15, %c0_16] : memref<1x10x64x36xbf16, #tpu.memory_space<vmem>>, vector<1x8x64x36xbf16>
    %16 = vector.shape_cast %15 : vector<1x8x64x36xbf16> to vector<8x64x36xbf16>
    %17 = vector.shape_cast %16 : vector<8x64x36xbf16> to vector<512x36xbf16>
    %c2_17 = arith.constant 2 : index
    %c0_18 = arith.constant 0 : index
    %c0_19 = arith.constant 0 : index
    %18 = vector.load %arg2[%c2_17, %c0_18, %c0_19] : memref<3x36x128xbf16, #tpu.memory_space<vmem>>, vector<1x36x128xbf16>
    %19 = vector.shape_cast %18 : vector<1x36x128xbf16> to vector<36x128xbf16>
    %cst_20 = arith.constant dense<0.000000e+00> : vector<512x128xf32>
    %20 = tpu.matmul %17, %19, %cst_20 {dimension_numbers = #tpu.dot_dimension_numbers<[1], [0], [0], [1], [0, 0, 1, 1], [], []>} : vector<512x36xbf16>, vector<36x128xbf16>, vector<512x128xf32> -> vector<512x128xf32>
    %21 = arith.addf %14, %20 : vector<512x128xf32>
    %22 = arith.truncf %21 : vector<512x128xf32> to vector<512x128xbf16>
    %c0_21 = arith.constant 0 : index
    %c0_22 = arith.constant 0 : index
    %c0_23 = arith.constant 0 : index
    %23 = vector.load %arg3[%c0_21, %c0_22, %c0_23] : memref<1x512x128xbf16, #tpu.memory_space<vmem>>, vector<1x512x128xbf16>
    %24 = vector.shape_cast %23 : vector<1x512x128xbf16> to vector<512x128xbf16>
    %25 = vector.shape_cast %22 : vector<512x128xbf16> to vector<1x512x128xbf16>
    tpu.vector_store %arg3[%c0_21, %c0_22, %c0_23], %25 {strides = array<i32>} : memref<1x512x128xbf16, #tpu.memory_space<vmem>>, vector<1x512x128xbf16>,
    %cst_24 = arith.constant dense<0.000000e+00> : vector<128xf32>
    %26 = vector.multi_reduction <add>, %21, %cst_24 [0] : vector<512x128xf32> to vector<128xf32>
    %27 = vector.shape_cast %26 : vector<128xf32> to vector<1x128xf32>
    %c0_25 = arith.constant 0 : index
    %c0_26 = arith.constant 0 : index
    %c0_27 = arith.constant 0 : index
    %28 = vector.load %arg4[%c0_25, %c0_26, %c0_27] : memref<1x1x128xf32, #tpu.memory_space<vmem>>, vector<1x1x128xf32>
    %29 = vector.shape_cast %28 : vector<1x1x128xf32> to vector<1x128xf32>
    %30 = vector.shape_cast %27 : vector<1x128xf32> to vector<1x1x128xf32>
    tpu.vector_store %arg4[%c0_25, %c0_26, %c0_27], %30 {strides = array<i32>} : memref<1x1x128xf32, #tpu.memory_space<vmem>>, vector<1x1x128xf32>,
    %31 = arith.mulf %21, %21 : vector<512x128xf32>
    %cst_28 = arith.constant dense<0.000000e+00> : vector<128xf32>
    %32 = vector.multi_reduction <add>, %31, %cst_28 [0] : vector<512x128xf32> to vector<128xf32>
    %33 = vector.shape_cast %32 : vector<128xf32> to vector<1x128xf32>
    %c0_29 = arith.constant 0 : index
    %c0_30 = arith.constant 0 : index
    %c0_31 = arith.constant 0 : index
    %34 = vector.load %arg5[%c0_29, %c0_30, %c0_31] : memref<1x1x128xf32, #tpu.memory_space<vmem>>, vector<1x1x128xf32>
    %35 = vector.shape_cast %34 : vector<1x1x128xf32> to vector<1x128xf32>
    %36 = vector.shape_cast %33 : vector<1x128xf32> to vector<1x1x128xf32>
    tpu.vector_store %arg5[%c0_29, %c0_30, %c0_31], %36 {strides = array<i32>} : memref<1x1x128xf32, #tpu.memory_space<vmem>>, vector<1x1x128xf32>,
    return
  }
  func.func @transform_0(%arg0: i32) -> (i32, i32, i32, i32) {
    %c0_i32 = arith.constant 0 : i32
    %c0_i32_0 = arith.constant 0 : i32
    %c0_i32_1 = arith.constant 0 : i32
    %c0_i32_2 = arith.constant 0 : i32
    return %arg0, %c0_i32, %c0_i32_0, %c0_i32_1 : i32, i32, i32, i32
  }
  func.func @transform_1(%arg0: i32) -> (i32, i32, i32) {
    %c0_i32 = arith.constant 0 : i32
    %c0_i32_0 = arith.constant 0 : i32
    %c0_i32_1 = arith.constant 0 : i32
    %c0_i32_2 = arith.constant 0 : i32
    return %c0_i32, %c0_i32_0, %c0_i32_1 : i32, i32, i32
  }
  func.func @transform_2(%arg0: i32) -> (i32, i32, i32) {
    %c0_i32 = arith.constant 0 : i32
    %c0_i32_0 = arith.constant 0 : i32
    %c0_i32_1 = arith.constant 0 : i32
    return %arg0, %c0_i32, %c0_i32_0 : i32, i32, i32
  }
  func.func @transform_3(%arg0: i32) -> (i32, i32, i32) {
    %c0_i32 = arith.constant 0 : i32
    %c0_i32_0 = arith.constant 0 : i32
    %c0_i32_1 = arith.constant 0 : i32
    return %arg0, %c0_i32, %c0_i32_0 : i32, i32, i32
  }
  func.func @transform_4(%arg0: i32) -> (i32, i32, i32) {
    %c0_i32 = arith.constant 0 : i32
    %c0_i32_0 = arith.constant 0 : i32
    %c0_i32_1 = arith.constant 0 : i32
    return %arg0, %c0_i32, %c0_i32_0 : i32, i32, i32
  }
}

module attributes {stable_mosaic.version = 11 : i64} {
  func.func @_bn_relu_kernel(%arg0: i32, %arg1: memref<2x512x128xbf16, #tpu.memory_space<vmem>>, %arg2: memref<1x1x128xf32, #tpu.memory_space<vmem>>, %arg3: memref<1x1x128xf32, #tpu.memory_space<vmem>>, %arg4: memref<2x512x128xf32, #tpu.memory_space<vmem>>) attributes {dimension_semantics = [#tpu.dimension_semantics<parallel>], iteration_bounds = array<i64: 1>, scalar_prefetch = 0 : i64, scratch_operands = 0 : i64, tpu.core_type = #tpu.core_type<tc>, window_params = [{transform_indices = @transform_0, window_bounds = array<i64: 2, 512, 128>}, {pipeline_mode = #tpu.pipeline_mode<synchronous>, transform_indices = @transform_1, window_bounds = array<i64: 1, 1, 128>}, {pipeline_mode = #tpu.pipeline_mode<synchronous>, transform_indices = @transform_2, window_bounds = array<i64: 1, 1, 128>}, {transform_indices = @transform_3, window_bounds = array<i64: 2, 512, 128>}]} {
    %c0 = arith.constant 0 : index
    %c0_0 = arith.constant 0 : index
    %c0_1 = arith.constant 0 : index
    %0 = vector.load %arg1[%c0, %c0_0, %c0_1] : memref<2x512x128xbf16, #tpu.memory_space<vmem>>, vector<2x512x128xbf16>
    %1 = arith.extf %0 : vector<2x512x128xbf16> to vector<2x512x128xf32>
    %c0_2 = arith.constant 0 : index
    %c0_3 = arith.constant 0 : index
    %c0_4 = arith.constant 0 : index
    %2 = vector.load %arg2[%c0_2, %c0_3, %c0_4] : memref<1x1x128xf32, #tpu.memory_space<vmem>>, vector<1x1x128xf32>
    %3 = vector.broadcast %2 : vector<1x1x128xf32> to vector<2x512x128xf32>
    %4 = arith.mulf %1, %3 : vector<2x512x128xf32>
    %c0_5 = arith.constant 0 : index
    %c0_6 = arith.constant 0 : index
    %c0_7 = arith.constant 0 : index
    %5 = vector.load %arg3[%c0_5, %c0_6, %c0_7] : memref<1x1x128xf32, #tpu.memory_space<vmem>>, vector<1x1x128xf32>
    %6 = vector.broadcast %5 : vector<1x1x128xf32> to vector<2x512x128xf32>
    %7 = arith.addf %4, %6 : vector<2x512x128xf32>
    %cst = arith.constant 0.000000e+00 : f32
    %8 = vector.broadcast %cst : f32 to vector<2x512x128xf32>
    %9 = arith.maximumf %7, %8 : vector<2x512x128xf32>
    %c0_8 = arith.constant 0 : index
    %c0_9 = arith.constant 0 : index
    %c0_10 = arith.constant 0 : index
    %10 = vector.load %arg4[%c0_8, %c0_9, %c0_10] : memref<2x512x128xf32, #tpu.memory_space<vmem>>, vector<2x512x128xf32>
    tpu.vector_store %arg4[%c0_8, %c0_9, %c0_10], %9 {strides = array<i32>} : memref<2x512x128xf32, #tpu.memory_space<vmem>>, vector<2x512x128xf32>,
    return
  }
  func.func @transform_0(%arg0: i32) -> (i32, i32, i32) {
    %c0_i32 = arith.constant 0 : i32
    %c0_i32_0 = arith.constant 0 : i32
    %c0_i32_1 = arith.constant 0 : i32
    return %arg0, %c0_i32, %c0_i32_0 : i32, i32, i32
  }
  func.func @transform_1(%arg0: i32) -> (i32, i32, i32) {
    %c0_i32 = arith.constant 0 : i32
    %c0_i32_0 = arith.constant 0 : i32
    %c0_i32_1 = arith.constant 0 : i32
    %c0_i32_2 = arith.constant 0 : i32
    return %c0_i32, %c0_i32_0, %c0_i32_1 : i32, i32, i32
  }
  func.func @transform_2(%arg0: i32) -> (i32, i32, i32) {
    %c0_i32 = arith.constant 0 : i32
    %c0_i32_0 = arith.constant 0 : i32
    %c0_i32_1 = arith.constant 0 : i32
    %c0_i32_2 = arith.constant 0 : i32
    return %c0_i32, %c0_i32_0, %c0_i32_1 : i32, i32, i32
  }
  func.func @transform_3(%arg0: i32) -> (i32, i32, i32) {
    %c0_i32 = arith.constant 0 : i32
    %c0_i32_0 = arith.constant 0 : i32
    %c0_i32_1 = arith.constant 0 : i32
    return %arg0, %c0_i32, %c0_i32_0 : i32, i32, i32
  }
}

</mosaic_0001>

<bundles_post_ra>
// kernel: conv3d_block.2
= control target key start
LH: loop header
LB: loop body
LE: loop exit
PB: predicated region body
PF: predicated region fallthrough
CT: control target
= control target key end

     0   :  { %s3256_s15 = smov 0   ;;  %s3756_s0 = inlined_call_operand.vmem [shape: bf16[2,10,64,36], index: 0, kind: input, shape index: {}]   ;;  %s3757_s1 = inlined_call_operand.vmem [shape: bf16[3,36,128], index: 1, kind: input, shape index: {}]   ;;  %s3758_s2 = inlined_call_operand.vmem [shape: bf16[2,512,128], index: 2, kind: output, shape index: {0}]   ;;  %s3759_s3 = inlined_call_operand.vmem [shape: f32[2,1,128], index: 3, kind: output, shape index: {1}]   ;;  %s3760_s4 = inlined_call_operand.vmem [shape: f32[2,1,128], index: 4, kind: output, shape index: {2}]  }
   0x1 LB: > { %s2259_s16 = sadd.s32 4294967295, %s3229_s15   ;;  %p2263_p0 = scmp.ge.s32.totalorder %s3229_s15, 1  ;;  %s3229_s15 = sphi %s3256_s15, %s15_s15  }
   0x2   : > { %p167_p1 = scmp.lt.s32.totalorder %s3229_s15, 3 }
   0x4   : > { %p168_p2 = pnand %p2263_p0, %p167_p1 }
   0x5   : > { %p199_p3 = scmp.lt.s32.totalorder (!%p168_p2), %s2259_s16, 1 }
   0x6   : > { %171 = sbr.rel (%p168_p2) target bundleno = 589 (0x24d), region = 28 }
   0xb   : > { %v2335_v0 = vld [vmem:[%s3757_s1 + $0x24] sm:$0x3]  ;;  %v284_v1 = vld [vmem:[%s3757_s1 + $0x10] sm:$0x3]  ;;  %v2740_v4 = vld [vmem:[%s3757_s1 + $0x38] sm:$0x3] }
   0xc   : > { %v525_v2 = vunpack.c.l.b16 %v2335_v0  ;;  %v970_v3 = vunpack.c.l.b16 %v284_v1  ;;  %vm628_vm0 = vcmask 1041408   ;;  %v1484_v5 = vunpack.c.l.b16 %v2740_v4  ;;  %s3762_s16 = smov (!%p199_p3, %s2259_s16), 1  ;;  %v2979_v12 = vld [vmem:[%s3757_s1 + $0x1c] sm:$0xff]  ;;  %v2945_v13 = vld [vmem:[%s3757_s1 + $0x8] sm:$0xff]  ;;  %v3013_v14 = vld [vmem:[%s3757_s1 + $0x30] sm:$0xff] }
   0xd   : > { %s3214_s25 = smul.u32 320, %s3762_s16  ;;  %v2978_v15 = vld [vmem:[%s3757_s1 + $0x14] sm:$0xff]  ;;  %v2944_v16 = vld [vmem:[%s3757_s1] sm:$0xff]  ;;  %v3012_v17 = vld [vmem:[%s3757_s1 + $0x28] sm:$0xff]  ;;  %vm531_vm1 = vcmask 293888   ;;  %s2911_s13 = sshll.u32 %s3762_s16, 8 }
   0xe   : > { %v528_v6 = vpack.c.b16 %v525_v2, %v525_v2  ;;  %v973_v7 = vpack.c.b16 %v970_v3, %v970_v3  ;;  %v1487_v8 = vpack.c.b16 %v1484_v5, %v1484_v5  ;;  %s3383_s18 = scalar_lea.vmem %s3758_s2, %s2911_s13  ;;  %s211_s21 = scalar_lea.vmem %s3759_s3, %s3762_s16 }
   0xf   : > { %s3291_s8 = scalar_lea.vmem %s3756_s0, %s3214_s25  ;;  %s214_s24 = scalar_lea.vmem %s3760_s4, %s3762_s16 }
  0x10   : > { %v630_v9 = vsel %vm628_vm0, %v528_v6, 0  ;;  %v1073_v10 = vsel %vm628_vm0, %v973_v7, 0  ;;  %v1587_v11 = vsel %vm628_vm0, %v1487_v8, 0  ;;  %v2946_v18 = vld [vmem:[%s3291_s8 + $0x20] sm:$0xff]  ;;  %v2947_v22 = vld [vmem:[%s3291_s8 + $0x28] sm:$0xff]  ;;  %v2948_v26 = vld [vmem:[%s3291_s8 + $0x30] sm:$0xff] }
  0x11   : > { %637 = vmatpush.bf16.msra.mxu0 %v630_v9  ;;  %3205 = vmatpush.bf16.msra.mxu3 %v630_v9  ;;  %v2970_v19 = vld [vmem:[%s3291_s8 + $0xe0] sm:$0xff]  ;;  %v2971_v23 = vld [vmem:[%s3291_s8 + $0xe8] sm:$0xff]  ;;  %v2972_v27 = vld [vmem:[%s3291_s8 + $0xf0] sm:$0xff] }
  0x12   : > { %1080 = vmatpush.bf16.msra.mxu1 %v1073_v10  ;;  %1594 = vmatpush.bf16.msra.mxu2 %v1587_v11  ;;  %v2912_v20 = vld [vmem:[%s3291_s8] sm:$0xff]  ;;  %v2913_v24 = vld [vmem:[%s3291_s8 + $0x8] sm:$0xff]  ;;  %v2914_v28 = vld [vmem:[%s3291_s8 + $0x10] sm:$0xff] }
  0x13   : > { %v2980_v21 = vld [vmem:[%s3291_s8 + $0x40] sm:$0xff]  ;;  %v2981_v25 = vld [vmem:[%s3291_s8 + $0x48] sm:$0xff]  ;;  %v2982_v29 = vld [vmem:[%s3291_s8 + $0x50] sm:$0xff] }
  0x14   : > { %v2949_v30 = vld [vmem:[%s3291_s8 + $0x38] sm:$0xff]  ;;  %v2950_v34 = vld [vmem:[%s3291_s8 + $0x40] sm:$0xff]  ;;  %v2951_v38 = vld [vmem:[%s3291_s8 + $0x48] sm:$0xff] }
  0x15   : > { %638 = vmatpush.bf16.msra.mxu0 %v2979_v12  ;;  %3206 = vmatpush.bf16.msra.mxu3 %v2979_v12  ;;  %v2973_v31 = vld [vmem:[%s3291_s8 + $0xf8] sm:$0xff]  ;;  %v2974_v35 = vld [vmem:[%s3291_s8 + $0x100] sm:$0xff]  ;;  %v2975_v39 = vld [vmem:[%s3291_s8 + $0x108] sm:$0xff] }
  0x16   : > { %1081 = vmatpush.bf16.msra.mxu1 %v2945_v13  ;;  %1595 = vmatpush.bf16.msra.mxu2 %v3013_v14  ;;  %v2915_v32 = vld [vmem:[%s3291_s8 + $0x18] sm:$0xff]  ;;  %v2916_v36 = vld [vmem:[%s3291_s8 + $0x20] sm:$0xff]  ;;  %v2917_v40 = vld [vmem:[%s3291_s8 + $0x28] sm:$0xff] }
  0x17   : > { %v2983_v33 = vld [vmem:[%s3291_s8 + $0x58] sm:$0xff]  ;;  %v2984_v37 = vld [vmem:[%s3291_s8 + $0x60] sm:$0xff]  ;;  %v2985_v41 = vld [vmem:[%s3291_s8 + $0x68] sm:$0xff] }
  0x18   : > { %v2952_v42 = vld [vmem:[%s3291_s8 + $0x50] sm:$0xff]  ;;  %v2953_v46 = vld [vmem:[%s3291_s8 + $0x58] sm:$0xff]  ;;  %v2954_v50 = vld [vmem:[%s3291_s8 + $0x60] sm:$0xff] }
  0x19   : > { %639 = vmatpush.bf16.msra.mxu0 %v2978_v15  ;;  %3207 = vmatpush.bf16.msra.mxu3 %v2978_v15  ;;  %v2976_v43 = vld [vmem:[%s3291_s8 + $0x110] sm:$0xff]  ;;  %v2977_v47 = vld [vmem:[%s3291_s8 + $0x118] sm:$0xff]  ;;  %v2936_v51 = vld [vmem:[%s3291_s8 + $0xc0] sm:$0xff] }
  0x1a   : > { %1082 = vmatpush.bf16.msra.mxu1 %v2944_v16  ;;  %1596 = vmatpush.bf16.msra.mxu2 %v3012_v17  ;;  %v2918_v44 = vld [vmem:[%s3291_s8 + $0x30] sm:$0xff]  ;;  %v2919_v48 = vld [vmem:[%s3291_s8 + $0x38] sm:$0xff]  ;;  %v2920_v53 = vld [vmem:[%s3291_s8 + $0x40] sm:$0xff] }
  0x1b   : > { %v2986_v45 = vld [vmem:[%s3291_s8 + $0x70] sm:$0xff]  ;;  %v2987_v49 = vld [vmem:[%s3291_s8 + $0x78] sm:$0xff]  ;;  %v2988_v54 = vld [vmem:[%s3291_s8 + $0x80] sm:$0xff] }
  0x1c   : > { %2472 = vmatmul.msk.bf16.vlgmr.msra.gmra.mxu0 %vm531_vm1, %v2946_v18  ;;  %2496 = vmatmul.msk.bf16.vlgmr.msra.gmra.mxu3 %vm531_vm1, %v2970_v19  ;;  %v2955_v1 = vld [vmem:[%s3291_s8 + $0x68] sm:$0xff] }
  0x1d   : > { %3208 = vmatpush.bf16.msrb.mxu3 %v1073_v10  ;;  %2640 = vmatmul.msk.bf16.vlgmr.msra.gmra.mxu1 %vm531_vm1, %v2912_v20  ;;  %v2937_v2 = vld [vmem:[%s3291_s8 + $0xc8] sm:$0xff] }
  0x1e   : > { %2877 = vmatmul.msk.bf16.vlgmr.msra.gmra.mxu2 %vm531_vm1, %v2980_v21  ;;  %v2921_v5 = vld [vmem:[%s3291_s8 + $0x48] sm:$0xff] }
  0x1f   : > { %v2989_v6 = vld [vmem:[%s3291_s8 + $0x88] sm:$0xff] }
  0x21   : > { %3209 = vmatpush.bf16.msrb.mxu3 %v2945_v13 }
  0x25   : > { %3210 = vmatpush.bf16.msrb.mxu3 %v2944_v16 }
  0x29   : > { %3211 = vmatpush.bf16.msra.mxu3 %v1587_v11 }
  0x2c   : > { %2473 = vmatmul.msk.bf16.gmra.mxu0 %vm531_vm1, %v2947_v22  ;;  %2497 = vmatmul.msk.bf16.gmra.mxu3 %vm531_vm1, %v2971_v23 }
  0x2d   : > { %3212 = vmatpush.bf16.msra.mxu3 %v3013_v14  ;;  %2641 = vmatmul.msk.bf16.gmra.mxu1 %vm531_vm1, %v2913_v24 }
  0x2e   : > { %2878 = vmatmul.msk.bf16.gmra.mxu2 %vm531_vm1, %v2981_v25  ;;  %v2956_v25 = vld [vmem:[%s3291_s8 + $0x70] sm:$0xff] }
  0x31   : > { %3213 = vmatpush.bf16.msra.mxu3 %v3012_v17 }
  0x3c   : > { %2474 = vmatmul.msk.bf16.gmra.mxu0 %vm531_vm1, %v2948_v26  ;;  %2498 = vmatmul.msk.bf16.gmra.mxu3 %vm531_vm1, %v2972_v27  ;;  %v2938_v26 = vld [vmem:[%s3291_s8 + $0xd0] sm:$0xff] }
  0x3d   : > { %2642 = vmatmul.msk.bf16.gmra.mxu1 %vm531_vm1, %v2914_v28 }
  0x3e   : > { %2879 = vmatmul.msk.bf16.gmra.mxu2 %vm531_vm1, %v2982_v29  ;;  %v2922_v29 = vld [vmem:[%s3291_s8 + $0x50] sm:$0xff] }
  0x4c   : > { %2475 = vmatmul.msk.bf16.gmra.mxu0 %vm531_vm1, %v2949_v30  ;;  %2499 = vmatmul.msk.bf16.gmra.mxu3 %vm531_vm1, %v2973_v31  ;;  %v2990_v30 = vld [vmem:[%s3291_s8 + $0x90] sm:$0xff] }
  0x4d   : > { %2643 = vmatmul.msk.bf16.gmra.mxu1 %vm531_vm1, %v2915_v32 }
  0x4e   : > { %2880 = vmatmul.msk.bf16.gmra.mxu2 %vm531_vm1, %v2983_v33 }
  0x5c   : > { %2476 = vmatmul.msk.bf16.gmra.mxu0 %vm531_vm1, %v2950_v34  ;;  %2500 = vmatmul.msk.bf16.gmra.mxu3 %vm531_vm1, %v2974_v35 }
  0x5d   : > { %2644 = vmatmul.msk.bf16.gmra.mxu1 %vm531_vm1, %v2916_v36 }
  0x5e   : > { %2881 = vmatmul.msk.bf16.gmra.mxu2 %vm531_vm1, %v2984_v37 }
  0x6c   : > { %2477 = vmatmul.msk.bf16.gmra.mxu0 %vm531_vm1, %v2951_v38  ;;  %2501 = vmatmul.msk.bf16.gmra.mxu3 %vm531_vm1, %v2975_v39 }
  0x6d   : > { %2645 = vmatmul.msk.bf16.gmra.mxu1 %vm531_vm1, %v2917_v40 }
  0x6e   : > { %2882 = vmatmul.msk.bf16.gmra.mxu2 %vm531_vm1, %v2985_v41 }
  0x7c   : > { %2478 = vmatmul.msk.bf16.gmra.mxu0 %vm531_vm1, %v2952_v42  ;;  %2502 = vmatmul.msk.bf16.gmra.mxu3 %vm531_vm1, %v2976_v43 }
  0x7d   : > { %2646 = vmatmul.msk.bf16.gmra.mxu1 %vm531_vm1, %v2918_v44 }
  0x7e   : > { %2883 = vmatmul.msk.bf16.gmra.mxu2 %vm531_vm1, %v2986_v45 }
  0x8c   : > { %2479 = vmatmul.msk.bf16.gmra.mxu0 %vm531_vm1, %v2953_v46  ;;  %2503 = vmatmul.msk.bf16.gmra.mxu3 %vm531_vm1, %v2977_v47 }
  0x8d   : > { %2647 = vmatmul.msk.bf16.gmra.mxu1 %vm531_vm1, %v2919_v48  ;;  %v2957_v48 = vld [vmem:[%s3291_s8 + $0x78] sm:$0xff] }
  0x8e   : > { %2884 = vmatmul.msk.bf16.gmra.mxu2 %vm531_vm1, %v2987_v49  ;;  %v2939_v49 = vld [vmem:[%s3291_s8 + $0xd8] sm:$0xff] }
  0x99   : > { %v641_v52 = vpop.f32.mrf.mxu0 }
  0x9a   : > { %v1084_v55 = vpop.f32.mrf.mxu1 }
  0x9b   : > { %v1085_v60 = vadd.f32 %v1084_v55, %v641_v52  ;;  %v2923_v52 = vld [vmem:[%s3291_s8 + $0x58] sm:$0xff] }
  0x9c   : > { %2480 = vmatmul.msk.bf16.gmra.mxu0 %vm531_vm1, %v2954_v50  ;;  %2664 = vmatmul.msk.bf16.vlgmr.msrb.gmra.mxu3 %vm531_vm1, %v2936_v51 }
  0x9d   : > { %2648 = vmatmul.msk.bf16.gmra.mxu1 %vm531_vm1, %v2920_v53  ;;  %v2991_v53 = vld [vmem:[%s3291_s8 + $0x98] sm:$0xff] }
  0x9e   : > { %2885 = vmatmul.msk.bf16.gmra.mxu2 %vm531_vm1, %v2988_v54 }
  0x9f   : > { %v3371_v56 = vpop.f32.mrf.mxu3 }
  0xa1   : > { %v1598_v57 = vpop.f32.mrf.mxu2  ;;  %v643_v58 = vpop.f32.mrf.mxu0 }
  0xa2   : > { %v1086_v59 = vpop.f32.mrf.mxu1  ;;  %v1758_v61 = vadd.f32 %v1598_v57, %v1085_v60 }
  0xa3   : > { %v1087_v62 = vadd.f32 %v1086_v59, %v643_v58 }
  0xa4   : > { %v2020_v8 = vmul.f32 %v1758_v61, %v1758_v61 }
  0xa7   : > { %v3373_v63 = vpop.f32.mrf.mxu3 }
  0xa9   : > { %v1600_v0 = vpop.f32.mrf.mxu2  ;;  %v646_v4 = vpop.f32.mrf.mxu0 }
  0xaa   : > { %v1759_v3 = vadd.f32 %v1600_v0, %v1087_v62  ;;  %v1089_v7 = vpop.f32.mrf.mxu1 }
  0xab   : > { %v1090_v13 = vadd.f32 %v1089_v7, %v646_v4 }
  0xac   : > { %v3017_v9 = vpack.c.bf16 %v1759_v3, %v1758_v61  ;;  %v1950_v10 = vadd.f32 %v1759_v3, %v1758_v61  ;;  %v2021_v11 = vmul.f32 %v1759_v3, %v1759_v3  ;;  %2481 = vmatmul.msk.bf16.gmra.mxu0 %vm531_vm1, %v2955_v1  ;;  %2665 = vmatmul.msk.bf16.gmra.mxu3 %vm531_vm1, %v2937_v2 }
  0xad   : > { %2649 = vmatmul.msk.bf16.gmra.mxu1 %vm531_vm1, %v2921_v5 }
  0xae   : > { %3018 = vst [vmem:[%s3383_s18] sm:$0xff] %v3017_v9   ;;  %v2084_v12 = vadd.f32 %v2021_v11, %v2020_v8  ;;  %2886 = vmatmul.msk.bf16.gmra.mxu2 %vm531_vm1, %v2989_v6  ;;  %v2958_v9 = vld [vmem:[%s3291_s8 + $0x80] sm:$0xff] }
  0xaf   : > { %v3390_v14 = vpop.f32.mrf.mxu3 }
  0xb1   : > { %v1603_v15 = vpop.f32.mrf.mxu2  ;;  %v648_v17 = vpop.f32.mrf.mxu0 }
  0xb2   : > { %v1760_v16 = vadd.f32 %v1603_v15, %v1090_v13  ;;  %v1091_v18 = vpop.f32.mrf.mxu1  ;;  %v2924_v13 = vld [vmem:[%s3291_s8 + $0x60] sm:$0xff] }
  0xb3   : > { %v1092_v22 = vadd.f32 %v1091_v18, %v648_v17  ;;  %v2992_v15 = vld [vmem:[%s3291_s8 + $0xa0] sm:$0xff] }
  0xb4   : > { %v1951_v19 = vadd.f32 %v1950_v10, %v1760_v16  ;;  %v2022_v20 = vmul.f32 %v1760_v16, %v1760_v16  ;;  %v2940_v10 = vld [vmem:[%s3291_s8 + $0xe0] sm:$0xff] }
  0xb6   : > { %v2085_v21 = vadd.f32 %v2084_v12, %v2022_v20 }
  0xb7   : > { %v3392_v23 = vpop.f32.mrf.mxu3 }
  0xb9   : > { %v1605_v24 = vpop.f32.mrf.mxu2  ;;  %v651_v28 = vpop.f32.mrf.mxu0 }
  0xba   : > { %v1761_v27 = vadd.f32 %v1605_v24, %v1092_v22  ;;  %v1094_v31 = vpop.f32.mrf.mxu1 }
  0xbb   : > { %v1095_v36 = vadd.f32 %v1094_v31, %v651_v28 }
  0xbc   : > { %v3022_v32 = vpack.c.bf16 %v1761_v27, %v1760_v16  ;;  %v1952_v33 = vadd.f32 %v1951_v19, %v1761_v27  ;;  %v2023_v34 = vmul.f32 %v1761_v27, %v1761_v27  ;;  %2482 = vmatmul.msk.bf16.gmra.mxu0 %vm531_vm1, %v2956_v25  ;;  %2666 = vmatmul.msk.bf16.gmra.mxu3 %vm531_vm1, %v2938_v26 }
  0xbd   : > { %2650 = vmatmul.msk.bf16.gmra.mxu1 %vm531_vm1, %v2922_v29 }
  0xbe   : > { %3174 = vst [vmem:[%s3383_s18 + $0x8] sm:$0xff] %v3022_v32   ;;  %v2086_v35 = vadd.f32 %v2085_v21, %v2023_v34  ;;  %2887 = vmatmul.msk.bf16.gmra.mxu2 %vm531_vm1, %v2990_v30  ;;  %v2959_v34 = vld [vmem:[%s3291_s8 + $0x88] sm:$0xff] }
  0xbf   : > { %v3403_v37 = vpop.f32.mrf.mxu3 }
  0xc1   : > { %v1608_v38 = vpop.f32.mrf.mxu2  ;;  %v653_v40 = vpop.f32.mrf.mxu0 }
  0xc2   : > { %v1762_v39 = vadd.f32 %v1608_v38, %v1095_v36  ;;  %v1096_v41 = vpop.f32.mrf.mxu1 }
  0xc3   : > { %v1097_v45 = vadd.f32 %v1096_v41, %v653_v40  ;;  %v2993_v40 = vld [vmem:[%s3291_s8 + $0xa8] sm:$0xff] }
  0xc4   : > { %v1953_v42 = vadd.f32 %v1952_v33, %v1762_v39  ;;  %v2024_v43 = vmul.f32 %v1762_v39, %v1762_v39 }
  0xc6   : > { %v2087_v44 = vadd.f32 %v2086_v35, %v2024_v43  ;;  %v2941_v35 = vld [vmem:[%s3291_s8 + $0xe8] sm:$0xff] }
  0xc7   : > { %v3405_v46 = vpop.f32.mrf.mxu3 }
  0xc9   : > { %v1610_v47 = vpop.f32.mrf.mxu2  ;;  %v656_v51 = vpop.f32.mrf.mxu0 }
  0xca   : > { %v1763_v50 = vadd.f32 %v1610_v47, %v1097_v45  ;;  %v1099_v54 = vpop.f32.mrf.mxu1 }
  0xcb   : > { %v1100_v60 = vadd.f32 %v1099_v54, %v656_v51 }
  0xcc   : > { %v3027_v55 = vpack.c.bf16 %v1763_v50, %v1762_v39  ;;  %v1954_v57 = vadd.f32 %v1953_v42, %v1763_v50  ;;  %v2025_v58 = vmul.f32 %v1763_v50, %v1763_v50  ;;  %2483 = vmatmul.msk.bf16.gmra.mxu0 %vm531_vm1, %v2957_v48  ;;  %2667 = vmatmul.msk.bf16.gmra.mxu3 %vm531_vm1, %v2939_v49  ;;  %v2925_v39 = vld [vmem:[%s3291_s8 + $0x68] sm:$0xff] }
  0xcd   : > { %2651 = vmatmul.msk.bf16.gmra.mxu1 %vm531_vm1, %v2923_v52 }
  0xce   : > { %3175 = vst [vmem:[%s3383_s18 + $0x10] sm:$0xff] %v3027_v55   ;;  %v2088_v59 = vadd.f32 %v2087_v44, %v2025_v58  ;;  %2888 = vmatmul.msk.bf16.gmra.mxu2 %vm531_vm1, %v2991_v53 }
  0xcf   : > { %v3416_v61 = vpop.f32.mrf.mxu3 }
  0xd1   : > { %v1613_v62 = vpop.f32.mrf.mxu2  ;;  %v658_v1 = vpop.f32.mrf.mxu0 }
  0xd2   : > { %v1764_v0 = vadd.f32 %v1613_v62, %v1100_v60  ;;  %v1101_v2 = vpop.f32.mrf.mxu1  ;;  %v2960_v60 = vld [vmem:[%s3291_s8 + $0x90] sm:$0xff] }
  0xd3   : > { %v1102_v6 = vadd.f32 %v1101_v2, %v658_v1  ;;  %v2942_v62 = vld [vmem:[%s3291_s8 + $0xf0] sm:$0xff] }
  0xd4   : > { %v1955_v3 = vadd.f32 %v1954_v57, %v1764_v0  ;;  %v2026_v4 = vmul.f32 %v1764_v0, %v1764_v0  ;;  %v2926_v2 = vld [vmem:[%s3291_s8 + $0x70] sm:$0xff] }
  0xd6   : > { %v2089_v5 = vadd.f32 %v2088_v59, %v2026_v4 }
  0xd7   : > { %v3418_v7 = vpop.f32.mrf.mxu3 }
  0xd9   : > { %v1615_v8 = vpop.f32.mrf.mxu2  ;;  %v661_v12 = vpop.f32.mrf.mxu0 }
  0xda   : > { %v1765_v11 = vadd.f32 %v1615_v8, %v1102_v6  ;;  %v1104_v16 = vpop.f32.mrf.mxu1 }
  0xdb   : > { %v1105_v21 = vadd.f32 %v1104_v16, %v661_v12 }
  0xdc   : > { %v3032_v17 = vpack.c.bf16 %v1765_v11, %v1764_v0  ;;  %v1956_v18 = vadd.f32 %v1955_v3, %v1765_v11  ;;  %v2027_v19 = vmul.f32 %v1765_v11, %v1765_v11  ;;  %2484 = vmatmul.msk.bf16.gmra.mxu0 %vm531_vm1, %v2958_v9  ;;  %2668 = vmatmul.msk.bf16.gmra.mxu3 %vm531_vm1, %v2940_v10  ;;  %v2994_v3 = vld [vmem:[%s3291_s8 + $0xb0] sm:$0xff] }
  0xdd   : > { %2652 = vmatmul.msk.bf16.gmra.mxu1 %vm531_vm1, %v2924_v13 }
  0xde   : > { %3176 = vst [vmem:[%s3383_s18 + $0x18] sm:$0xff] %v3032_v17   ;;  %v2090_v20 = vadd.f32 %v2089_v5, %v2027_v19  ;;  %2889 = vmatmul.msk.bf16.gmra.mxu2 %vm531_vm1, %v2992_v15 }
  0xdf   : > { %v3429_v22 = vpop.f32.mrf.mxu3 }
  0xe1   : > { %v1618_v24 = vpop.f32.mrf.mxu2  ;;  %v663_v26 = vpop.f32.mrf.mxu0 }
  0xe2   : > { %v1766_v25 = vadd.f32 %v1618_v24, %v1105_v21  ;;  %v1106_v27 = vpop.f32.mrf.mxu1 }
  0xe3   : > { %v1107_v31 = vadd.f32 %v1106_v27, %v663_v26  ;;  %v2943_v26 = vld [vmem:[%s3291_s8 + $0xf8] sm:$0xff] }
  0xe4   : > { %v1957_v28 = vadd.f32 %v1956_v18, %v1766_v25  ;;  %v2028_v29 = vmul.f32 %v1766_v25, %v1766_v25 }
  0xe6   : > { %v2091_v30 = vadd.f32 %v2090_v20, %v2028_v29  ;;  %v2927_v29 = vld [vmem:[%s3291_s8 + $0x78] sm:$0xff] }
  0xe7   : > { %v3431_v32 = vpop.f32.mrf.mxu3 }
  0xe9   : > { %v1620_v33 = vpop.f32.mrf.mxu2  ;;  %v666_v38 = vpop.f32.mrf.mxu0 }
  0xea   : > { %v1767_v36 = vadd.f32 %v1620_v33, %v1107_v31  ;;  %v1109_v41 = vpop.f32.mrf.mxu1 }
  0xeb   : > { %v1110_v47 = vadd.f32 %v1109_v41, %v666_v38 }
  0xec   : > { %v3037_v42 = vpack.c.bf16 %v1767_v36, %v1766_v25  ;;  %v1958_v43 = vadd.f32 %v1957_v28, %v1767_v36  ;;  %v2029_v44 = vmul.f32 %v1767_v36, %v1767_v36  ;;  %2485 = vmatmul.msk.bf16.gmra.mxu0 %vm531_vm1, %v2959_v34  ;;  %2669 = vmatmul.msk.bf16.gmra.mxu3 %vm531_vm1, %v2941_v35  ;;  %v2961_v25 = vld [vmem:[%s3291_s8 + $0x98] sm:$0xff] }
  0xed   : > { %2653 = vmatmul.msk.bf16.gmra.mxu1 %vm531_vm1, %v2925_v39 }
  0xee   : > { %3177 = vst [vmem:[%s3383_s18 + $0x20] sm:$0xff] %v3037_v42   ;;  %v2092_v45 = vadd.f32 %v2091_v30, %v2029_v44  ;;  %2890 = vmatmul.msk.bf16.gmra.mxu2 %vm531_vm1, %v2993_v40  ;;  %v2995_v30 = vld [vmem:[%s3291_s8 + $0xb8] sm:$0xff] }
  0xef   : > { %v3442_v48 = vpop.f32.mrf.mxu3 }
  0xf1   : > { %v1623_v49 = vpop.f32.mrf.mxu2  ;;  %v668_v51 = vpop.f32.mrf.mxu0 }
  0xf2   : > { %v1768_v50 = vadd.f32 %v1623_v49, %v1110_v47  ;;  %v1111_v52 = vpop.f32.mrf.mxu1 }
  0xf3   : > { %v1112_v57 = vadd.f32 %v1111_v52, %v668_v51  ;;  %v2962_v52 = vld [vmem:[%s3291_s8 + $0xa0] sm:$0xff] }
  0xf4   : > { %v1959_v53 = vadd.f32 %v1958_v43, %v1768_v50  ;;  %v2030_v54 = vmul.f32 %v1768_v50, %v1768_v50 }
  0xf6   : > { %v2093_v55 = vadd.f32 %v2092_v45, %v2030_v54 }
  0xf7   : > { %v3444_v58 = vpop.f32.mrf.mxu3 }
  0xf9   : > { %v1625_v59 = vpop.f32.mrf.mxu2  ;;  %v671_v1 = vpop.f32.mrf.mxu0 }
  0xfa   : > { %v1769_v0 = vadd.f32 %v1625_v59, %v1112_v57  ;;  %v1114_v4 = vpop.f32.mrf.mxu1  ;;  %v2928_v57 = vld [vmem:[%s3291_s8 + $0x80] sm:$0xff] }
  0xfb   : > { %v1115_v10 = vadd.f32 %v1114_v4, %v671_v1  ;;  %v2996_v59 = vld [vmem:[%s3291_s8 + $0xc0] sm:$0xff] }
  0xfc   : > { %v3042_v5 = vpack.c.bf16 %v1769_v0, %v1768_v50  ;;  %v1960_v6 = vadd.f32 %v1959_v53, %v1769_v0  ;;  %v2031_v8 = vmul.f32 %v1769_v0, %v1769_v0  ;;  %2486 = vmatmul.msk.bf16.gmra.mxu0 %vm531_vm1, %v2960_v60  ;;  %2670 = vmatmul.msk.bf16.gmra.mxu3 %vm531_vm1, %v2942_v62  ;;  %v3004_v53 = vld [vmem:[%s3291_s8 + $0x100] sm:$0xff] }
  0xfd   : > { %2654 = vmatmul.msk.bf16.gmra.mxu1 %vm531_vm1, %v2926_v2 }
  0xfe   : > { %3178 = vst [vmem:[%s3383_s18 + $0x28] sm:$0xff] %v3042_v5   ;;  %v2094_v9 = vadd.f32 %v2093_v55, %v2031_v8  ;;  %2891 = vmatmul.msk.bf16.gmra.mxu2 %vm531_vm1, %v2994_v3 }
  0xff   : > { %v3455_v11 = vpop.f32.mrf.mxu3 }
 0x101   : > { %v1628_v12 = vpop.f32.mrf.mxu2  ;;  %v673_v15 = vpop.f32.mrf.mxu0 }
 0x102   : > { %v1770_v13 = vadd.f32 %v1628_v12, %v1115_v10  ;;  %v1116_v16 = vpop.f32.mrf.mxu1 }
 0x103   : > { %v1117_v20 = vadd.f32 %v1116_v16, %v673_v15 }
 0x104   : > { %v1961_v17 = vadd.f32 %v1960_v6, %v1770_v13  ;;  %v2032_v18 = vmul.f32 %v1770_v13, %v1770_v13 }
 0x106   : > { %v2095_v19 = vadd.f32 %v2094_v9, %v2032_v18  ;;  %v2963_v18 = vld [vmem:[%s3291_s8 + $0xa8] sm:$0xff] }
 0x107   : > { %v3457_v21 = vpop.f32.mrf.mxu3 }
 0x109   : > { %v1630_v24 = vpop.f32.mrf.mxu2  ;;  %v676_v28 = vpop.f32.mrf.mxu0 }
 0x10a   : > { %v1771_v27 = vadd.f32 %v1630_v24, %v1117_v20  ;;  %v1119_v31 = vpop.f32.mrf.mxu1 }
 0x10b   : > { %v1120_v38 = vadd.f32 %v1119_v31, %v676_v28 }
 0x10c   : > { %v3047_v33 = vpack.c.bf16 %v1771_v27, %v1770_v13  ;;  %v1962_v34 = vadd.f32 %v1961_v17, %v1771_v27  ;;  %v2033_v35 = vmul.f32 %v1771_v27, %v1771_v27  ;;  %2487 = vmatmul.msk.bf16.gmra.mxu0 %vm531_vm1, %v2961_v25  ;;  %2671 = vmatmul.msk.bf16.gmra.mxu3 %vm531_vm1, %v2943_v26  ;;  %v2929_v25 = vld [vmem:[%s3291_s8 + $0x88] sm:$0xff] }
 0x10d   : > { %2655 = vmatmul.msk.bf16.gmra.mxu1 %vm531_vm1, %v2927_v29  ;;  %v2997_v26 = vld [vmem:[%s3291_s8 + $0xc8] sm:$0xff] }
 0x10e   : > { %3179 = vst [vmem:[%s3383_s18 + $0x30] sm:$0xff] %v3047_v33   ;;  %v2096_v36 = vadd.f32 %v2095_v19, %v2033_v35  ;;  %2892 = vmatmul.msk.bf16.gmra.mxu2 %vm531_vm1, %v2995_v30  ;;  %v3005_v19 = vld [vmem:[%s3291_s8 + $0x108] sm:$0xff] }
 0x10f   : > { %v3468_v39 = vpop.f32.mrf.mxu3 }
 0x111   : > { %v1633_v40 = vpop.f32.mrf.mxu2  ;;  %v678_v42 = vpop.f32.mrf.mxu0 }
 0x112   : > { %v1772_v41 = vadd.f32 %v1633_v40, %v1120_v38  ;;  %v1121_v43 = vpop.f32.mrf.mxu1 }
 0x113   : > { %v1122_v49 = vadd.f32 %v1121_v43, %v678_v42 }
 0x114   : > { %v1963_v44 = vadd.f32 %v1962_v34, %v1772_v41  ;;  %v2034_v45 = vmul.f32 %v1772_v41, %v1772_v41 }
 0x116   : > { %v2097_v47 = vadd.f32 %v2096_v36, %v2034_v45 }
 0x117   : > { %v3470_v50 = vpop.f32.mrf.mxu3 }
 0x119   : > { %v1635_v51 = vpop.f32.mrf.mxu2  ;;  %v681_v55 = vpop.f32.mrf.mxu0 }
 0x11a   : > { %v1773_v54 = vadd.f32 %v1635_v51, %v1122_v49  ;;  %v1124_v60 = vpop.f32.mrf.mxu1  ;;  %v2964_v49 = vld [vmem:[%s3291_s8 + $0xb0] sm:$0xff] }
 0x11b   : > { %v1125_v3 = vadd.f32 %v1124_v60, %v681_v55  ;;  %v3006_v51 = vld [vmem:[%s3291_s8 + $0x110] sm:$0xff] }
 0x11c   : > { %v3052_v62 = vpack.c.bf16 %v1773_v54, %v1772_v41  ;;  %v1964_v0 = vadd.f32 %v1963_v44, %v1773_v54  ;;  %v2035_v1 = vmul.f32 %v1773_v54, %v1773_v54  ;;  %2488 = vmatmul.msk.bf16.gmra.mxu0 %vm531_vm1, %v2962_v52  ;;  %2901 = vmatmul.msk.bf16.vlgmr.msra.gmra.mxu3 %vm531_vm1, %v3004_v53  ;;  %v2930_v54 = vld [vmem:[%s3291_s8 + $0x90] sm:$0xff] }
 0x11d   : > { %2656 = vmatmul.msk.bf16.gmra.mxu1 %vm531_vm1, %v2928_v57  ;;  %v2998_v55 = vld [vmem:[%s3291_s8 + $0xd0] sm:$0xff] }
 0x11e   : > { %3180 = vst [vmem:[%s3383_s18 + $0x38] sm:$0xff] %v3052_v62   ;;  %v2098_v2 = vadd.f32 %v2097_v47, %v2035_v1  ;;  %2893 = vmatmul.msk.bf16.gmra.mxu2 %vm531_vm1, %v2996_v59 }
 0x11f   : > { %v3481_v4 = vpop.f32.mrf.mxu3 }
 0x121   : > { %v1638_v5 = vpop.f32.mrf.mxu2  ;;  %v683_v8 = vpop.f32.mrf.mxu0 }
 0x122   : > { %v1774_v6 = vadd.f32 %v1638_v5, %v1125_v3  ;;  %v1126_v9 = vpop.f32.mrf.mxu1 }
 0x123   : > { %v1127_v15 = vadd.f32 %v1126_v9, %v683_v8 }
 0x124   : > { %v1965_v10 = vadd.f32 %v1964_v0, %v1774_v6  ;;  %v2036_v12 = vmul.f32 %v1774_v6, %v1774_v6 }
 0x126   : > { %v2099_v13 = vadd.f32 %v2098_v2, %v2036_v12 }
 0x127   : > { %v3483_v16 = vpop.f32.mrf.mxu3 }
 0x129   : > { %v1640_v17 = vpop.f32.mrf.mxu2  ;;  %v686_v24 = vpop.f32.mrf.mxu0 }
 0x12a   : > { %v1775_v20 = vadd.f32 %v1640_v17, %v1127_v15  ;;  %v1129_v27 = vpop.f32.mrf.mxu1 }
 0x12b   : > { %v1130_v33 = vadd.f32 %v1129_v27, %v686_v24 }
 0x12c   : > { %v3057_v28 = vpack.c.bf16 %v1775_v20, %v1774_v6  ;;  %v1966_v29 = vadd.f32 %v1965_v10, %v1775_v20  ;;  %v2037_v30 = vmul.f32 %v1775_v20, %v1775_v20  ;;  %2489 = vmatmul.msk.bf16.gmra.mxu0 %vm531_vm1, %v2963_v18  ;;  %2902 = vmatmul.msk.bf16.gmra.mxu3 %vm531_vm1, %v3005_v19  ;;  %v2965_v18 = vld [vmem:[%s3291_s8 + $0xb8] sm:$0xff] }
 0x12d   : > { %2657 = vmatmul.msk.bf16.gmra.mxu1 %vm531_vm1, %v2929_v25  ;;  %v3007_v19 = vld [vmem:[%s3291_s8 + $0x118] sm:$0xff] }
 0x12e   : > { %3181 = vst [vmem:[%s3383_s18 + $0x40] sm:$0xff] %v3057_v28   ;;  %v2100_v31 = vadd.f32 %v2099_v13, %v2037_v30  ;;  %2894 = vmatmul.msk.bf16.gmra.mxu2 %vm531_vm1, %v2997_v26  ;;  %v2931_v25 = vld [vmem:[%s3291_s8 + $0x98] sm:$0xff] }
 0x12f   : > { %v3494_v34 = vpop.f32.mrf.mxu3  ;;  %v2999_v26 = vld [vmem:[%s3291_s8 + $0xd8] sm:$0xff] }
 0x131   : > { %v1643_v35 = vpop.f32.mrf.mxu2  ;;  %v688_v38 = vpop.f32.mrf.mxu0 }
 0x132   : > { %v1776_v36 = vadd.f32 %v1643_v35, %v1130_v33  ;;  %v1131_v40 = vpop.f32.mrf.mxu1 }
 0x133   : > { %v1132_v44 = vadd.f32 %v1131_v40, %v688_v38 }
 0x134   : > { %v1967_v41 = vadd.f32 %v1966_v29, %v1776_v36  ;;  %v2038_v42 = vmul.f32 %v1776_v36, %v1776_v36 }
 0x136   : > { %v2101_v43 = vadd.f32 %v2100_v31, %v2038_v42 }
 0x137   : > { %v3496_v45 = vpop.f32.mrf.mxu3 }
 0x139   : > { %v1645_v47 = vpop.f32.mrf.mxu2  ;;  %v691_v53 = vpop.f32.mrf.mxu0 }
 0x13a   : > { %v1777_v52 = vadd.f32 %v1645_v47, %v1132_v44  ;;  %v1134_v57 = vpop.f32.mrf.mxu1 }
 0x13b   : > { %v1135_v1 = vadd.f32 %v1134_v57, %v691_v53  ;;  %v3008_v53 = vld [vmem:[%s3291_s8 + $0x120] sm:$0xff] }
 0x13c   : > { %v3062_v59 = vpack.c.bf16 %v1777_v52, %v1776_v36  ;;  %v1968_v60 = vadd.f32 %v1967_v41, %v1777_v52  ;;  %v2039_v62 = vmul.f32 %v1777_v52, %v1777_v52  ;;  %2490 = vmatmul.msk.bf16.gmra.mxu0 %vm531_vm1, %v2964_v49  ;;  %2903 = vmatmul.msk.bf16.gmra.mxu3 %vm531_vm1, %v3006_v51  ;;  %v2966_v52 = vld [vmem:[%s3291_s8 + $0xc0] sm:$0xff] }
 0x13d   : > { %2658 = vmatmul.msk.bf16.gmra.mxu1 %vm531_vm1, %v2930_v54  ;;  %v2932_v57 = vld [vmem:[%s3291_s8 + $0xa0] sm:$0xff] }
 0x13e   : > { %3182 = vst [vmem:[%s3383_s18 + $0x48] sm:$0xff] %v3062_v59   ;;  %v2102_v0 = vadd.f32 %v2101_v43, %v2039_v62  ;;  %2895 = vmatmul.msk.bf16.gmra.mxu2 %vm531_vm1, %v2998_v55  ;;  %v3000_v59 = vld [vmem:[%s3291_s8 + $0xe0] sm:$0xff] }
 0x13f   : > { %v3507_v2 = vpop.f32.mrf.mxu3 }
 0x141   : > { %v1648_v3 = vpop.f32.mrf.mxu2  ;;  %v693_v6 = vpop.f32.mrf.mxu0 }
 0x142   : > { %v1778_v5 = vadd.f32 %v1648_v3, %v1135_v1  ;;  %v1136_v8 = vpop.f32.mrf.mxu1 }
 0x143   : > { %v1137_v13 = vadd.f32 %v1136_v8, %v693_v6 }
 0x144   : > { %v1969_v9 = vadd.f32 %v1968_v60, %v1778_v5  ;;  %v2040_v10 = vmul.f32 %v1778_v5, %v1778_v5 }
 0x146   : > { %v2103_v12 = vadd.f32 %v2102_v0, %v2040_v10 }
 0x147   : > { %v3509_v15 = vpop.f32.mrf.mxu3 }
 0x149   : > { %v1650_v17 = vpop.f32.mrf.mxu2  ;;  %v696_v24 = vpop.f32.mrf.mxu0 }
 0x14a   : > { %v1779_v20 = vadd.f32 %v1650_v17, %v1137_v13  ;;  %v1139_v27 = vpop.f32.mrf.mxu1 }
 0x14b   : > { %v1140_v33 = vadd.f32 %v1139_v27, %v696_v24 }
 0x14c   : > { %v3067_v28 = vpack.c.bf16 %v1779_v20, %v1778_v5  ;;  %v1970_v29 = vadd.f32 %v1969_v9, %v1779_v20  ;;  %v2041_v30 = vmul.f32 %v1779_v20, %v1779_v20  ;;  %2491 = vmatmul.msk.bf16.gmra.mxu0 %vm531_vm1, %v2965_v18  ;;  %2904 = vmatmul.msk.bf16.gmra.mxu3 %vm531_vm1, %v3007_v19 }
 0x14d   : > { %2659 = vmatmul.msk.bf16.gmra.mxu1 %vm531_vm1, %v2931_v25  ;;  %v2967_v25 = vld [vmem:[%s3291_s8 + $0xc8] sm:$0xff] }
 0x14e   : > { %3183 = vst [vmem:[%s3383_s18 + $0x50] sm:$0xff] %v3067_v28   ;;  %v2104_v31 = vadd.f32 %v2103_v12, %v2041_v30  ;;  %2896 = vmatmul.msk.bf16.gmra.mxu2 %vm531_vm1, %v2999_v26  ;;  %v3009_v26 = vld [vmem:[%s3291_s8 + $0x128] sm:$0xff] }
 0x14f   : > { %v3520_v35 = vpop.f32.mrf.mxu3  ;;  %v3001_v30 = vld [vmem:[%s3291_s8 + $0xe8] sm:$0xff] }
 0x151   : > { %v1653_v36 = vpop.f32.mrf.mxu2  ;;  %v698_v40 = vpop.f32.mrf.mxu0 }
 0x152   : > { %v1780_v38 = vadd.f32 %v1653_v36, %v1140_v33  ;;  %v1141_v41 = vpop.f32.mrf.mxu1 }
 0x153   : > { %v1142_v47 = vadd.f32 %v1141_v41, %v698_v40 }
 0x154   : > { %v1971_v42 = vadd.f32 %v1970_v29, %v1780_v38  ;;  %v2042_v43 = vmul.f32 %v1780_v38, %v1780_v38  ;;  %v2933_v29 = vld [vmem:[%s3291_s8 + $0xa8] sm:$0xff] }
 0x156   : > { %v2105_v44 = vadd.f32 %v2104_v31, %v2042_v43 }
 0x157   : > { %v3522_v49 = vpop.f32.mrf.mxu3 }
 0x159   : > { %v1655_v51 = vpop.f32.mrf.mxu2  ;;  %v701_v55 = vpop.f32.mrf.mxu0 }
 0x15a   : > { %v1781_v54 = vadd.f32 %v1655_v51, %v1142_v47  ;;  %v1144_v60 = vpop.f32.mrf.mxu1 }
 0x15b   : > { %v1145_v5 = vadd.f32 %v1144_v60, %v701_v55  ;;  %v2968_v60 = vld [vmem:[%s3291_s8 + $0xd0] sm:$0xff] }
 0x15c   : > { %v3072_v62 = vpack.c.bf16 %v1781_v54, %v1780_v38  ;;  %v1972_v0 = vadd.f32 %v1971_v42, %v1781_v54  ;;  %v2043_v1 = vmul.f32 %v1781_v54, %v1781_v54  ;;  %2492 = vmatmul.msk.bf16.gmra.mxu0 %vm531_vm1, %v2966_v52  ;;  %2905 = vmatmul.msk.bf16.gmra.mxu3 %vm531_vm1, %v3008_v53 }
 0x15d   : > { %2660 = vmatmul.msk.bf16.gmra.mxu1 %vm531_vm1, %v2932_v57 }
 0x15e   : > { %3184 = vst [vmem:[%s3383_s18 + $0x58] sm:$0xff] %v3072_v62   ;;  %v2106_v3 = vadd.f32 %v2105_v44, %v2043_v1  ;;  %2897 = vmatmul.msk.bf16.gmra.mxu2 %vm531_vm1, %v3000_v59  ;;  %v3010_v62 = vld [vmem:[%s3291_s8 + $0x130] sm:$0xff] }
 0x15f   : > { %v3533_v6 = vpop.f32.mrf.mxu3 }
 0x161   : > { %v1658_v8 = vpop.f32.mrf.mxu2  ;;  %v703_v10 = vpop.f32.mrf.mxu0 }
 0x162   : > { %v1782_v9 = vadd.f32 %v1658_v8, %v1145_v5  ;;  %v1146_v12 = vpop.f32.mrf.mxu1  ;;  %v3002_v5 = vld [vmem:[%s3291_s8 + $0xf0] sm:$0xff] }
 0x163   : > { %v1147_v19 = vadd.f32 %v1146_v12, %v703_v10 }
 0x164   : > { %v1973_v13 = vadd.f32 %v1972_v0, %v1782_v9  ;;  %v2044_v17 = vmul.f32 %v1782_v9, %v1782_v9 }
 0x166   : > { %v2107_v18 = vadd.f32 %v2106_v3, %v2044_v17  ;;  %v2934_v3 = vld [vmem:[%s3291_s8 + $0xb0] sm:$0xff] }
 0x167   : > { %v3535_v20 = vpop.f32.mrf.mxu3 }
 0x169   : > { %v1660_v24 = vpop.f32.mrf.mxu2  ;;  %v706_v28 = vpop.f32.mrf.mxu0 }
 0x16a   : > { %v1783_v27 = vadd.f32 %v1660_v24, %v1147_v19  ;;  %v1149_v31 = vpop.f32.mrf.mxu1 }
 0x16b   : > { %v1150_v41 = vadd.f32 %v1149_v31, %v706_v28 }
 0x16c   : > { %v3077_v33 = vpack.c.bf16 %v1783_v27, %v1782_v9  ;;  %v1974_v36 = vadd.f32 %v1973_v13, %v1783_v27  ;;  %v2045_v38 = vmul.f32 %v1783_v27, %v1783_v27  ;;  %2493 = vmatmul.msk.bf16.gmra.mxu0 %vm531_vm1, %v2967_v25  ;;  %2906 = vmatmul.msk.bf16.gmra.mxu3 %vm531_vm1, %v3009_v26 }
 0x16d   : > { %2661 = vmatmul.msk.bf16.gmra.mxu1 %vm531_vm1, %v2933_v29 }
 0x16e   : > { %3185 = vst [vmem:[%s3383_s18 + $0x60] sm:$0xff] %v3077_v33   ;;  %v2108_v40 = vadd.f32 %v2107_v18, %v2045_v38  ;;  %2898 = vmatmul.msk.bf16.gmra.mxu2 %vm531_vm1, %v3001_v30  ;;  %v3011_v38 = vld [vmem:[%s3291_s8 + $0x138] sm:$0xff] }
 0x16f   : > { %v3546_v42 = vpop.f32.mrf.mxu3 }
 0x171   : > { %v1663_v43 = vpop.f32.mrf.mxu2  ;;  %v708_v47 = vpop.f32.mrf.mxu0 }
 0x172   : > { %v1784_v44 = vadd.f32 %v1663_v43, %v1150_v41  ;;  %v1151_v51 = vpop.f32.mrf.mxu1  ;;  %v2935_v43 = vld [vmem:[%s3291_s8 + $0xb8] sm:$0xff] }
 0x173   : > { %v1152_v55 = vadd.f32 %v1151_v51, %v708_v47 }
 0x174   : > { %v1975_v52 = vadd.f32 %v1974_v36, %v1784_v44  ;;  %v2046_v53 = vmul.f32 %v1784_v44, %v1784_v44  ;;  %v2969_v36 = vld [vmem:[%s3291_s8 + $0xd8] sm:$0xff] }
 0x176   : > { %v2109_v54 = vadd.f32 %v2108_v40, %v2046_v53 }
 0x177   : > { %v3548_v57 = vpop.f32.mrf.mxu3 }
 0x179   : > { %v1665_v59 = vpop.f32.mrf.mxu2  ;;  %v711_v1 = vpop.f32.mrf.mxu0 }
 0x17a   : > { %v1785_v0 = vadd.f32 %v1665_v59, %v1152_v55  ;;  %v1154_v8 = vpop.f32.mrf.mxu1 }
 0x17b   : > { %v1155_v17 = vadd.f32 %v1154_v8, %v711_v1 }
 0x17c   : > { %v3082_v9 = vpack.c.bf16 %v1785_v0, %v1784_v44  ;;  %v1976_v10 = vadd.f32 %v1975_v52, %v1785_v0  ;;  %v2047_v12 = vmul.f32 %v1785_v0, %v1785_v0  ;;  %2494 = vmatmul.msk.bf16.gmra.mxu0 %vm531_vm1, %v2968_v60  ;;  %2907 = vmatmul.msk.bf16.gmra.mxu3 %vm531_vm1, %v3010_v62  ;;  %v3003_v44 = vld [vmem:[%s3291_s8 + $0xf8] sm:$0xff] }
 0x17d   : > { %2662 = vmatmul.msk.bf16.gmra.mxu1 %vm531_vm1, %v2934_v3 }
 0x17e   : > { %3186 = vst [vmem:[%s3383_s18 + $0x68] sm:$0xff] %v3082_v9   ;;  %v2110_v13 = vadd.f32 %v2109_v54, %v2047_v12  ;;  %2899 = vmatmul.msk.bf16.gmra.mxu2 %vm531_vm1, %v3002_v5 }
 0x17f   : > { %v3559_v18 = vpop.f32.mrf.mxu3 }
 0x181   : > { %v1668_v19 = vpop.f32.mrf.mxu2  ;;  %v713_v25 = vpop.f32.mrf.mxu0 }
 0x182   : > { %v1786_v24 = vadd.f32 %v1668_v19, %v1155_v17  ;;  %v1156_v26 = vpop.f32.mrf.mxu1 }
 0x183   : > { %v1157_v30 = vadd.f32 %v1156_v26, %v713_v25 }
 0x184   : > { %v1977_v27 = vadd.f32 %v1976_v10, %v1786_v24  ;;  %v2048_v28 = vmul.f32 %v1786_v24, %v1786_v24 }
 0x186   : > { %v2111_v29 = vadd.f32 %v2110_v13, %v2048_v28 }
 0x187   : > { %v3561_v31 = vpop.f32.mrf.mxu3 }
 0x189   : > { %v1670_v33 = vpop.f32.mrf.mxu2  ;;  %v716_v41 = vpop.f32.mrf.mxu0 }
 0x18a   : > { %v1787_v40 = vadd.f32 %v1670_v33, %v1157_v30  ;;  %v1159_v47 = vpop.f32.mrf.mxu1 }
 0x18b   : > { %v1160_v55 = vadd.f32 %v1159_v47, %v716_v41  ;;  %v1207_v47 = vadd.f32 %v3483_v16, %v3373_v63 }
 0x18c   : > { %v3087_v51 = vpack.c.bf16 %v1787_v40, %v1786_v24  ;;  %v1978_v52 = vadd.f32 %v1977_v27, %v1787_v40  ;;  %v2049_v53 = vmul.f32 %v1787_v40, %v1787_v40  ;;  %2495 = vmatmul.msk.bf16.gmra.mxu0 %vm531_vm1, %v2969_v36  ;;  %2908 = vmatmul.msk.bf16.gmra.mxu3 %vm531_vm1, %v3011_v38 }
 0x18d   : > { %2663 = vmatmul.msk.bf16.gmra.mxu1 %vm531_vm1, %v2935_v43 }
 0x18e   : > { %3187 = vst [vmem:[%s3383_s18 + $0x70] sm:$0xff] %v3087_v51   ;;  %v2112_v54 = vadd.f32 %v2111_v29, %v2049_v53  ;;  %2900 = vmatmul.msk.bf16.gmra.mxu2 %vm531_vm1, %v3003_v44  ;;  %v1205_v44 = vadd.f32 %v3481_v4, %v3371_v56 }
 0x18f   : > { %v3572_v59 = vpop.f32.mrf.mxu3 }
 0x191   : > { %v1673_v60 = vpop.f32.mrf.mxu2  ;;  %v718_v0 = vpop.f32.mrf.mxu0 }
 0x192   : > { %v1788_v62 = vadd.f32 %v1673_v60, %v1160_v55  ;;  %v1161_v1 = vpop.f32.mrf.mxu1 }
 0x193   : > { %v1162_v9 = vadd.f32 %v1161_v1, %v718_v0 }
 0x194   : > { %v1979_v3 = vadd.f32 %v1978_v52, %v1788_v62  ;;  %v2050_v5 = vmul.f32 %v1788_v62, %v1788_v62 }
 0x196   : > { %v2113_v8 = vadd.f32 %v2112_v54, %v2050_v5 }
 0x197   : > { %v3574_v10 = vpop.f32.mrf.mxu3 }
 0x199   : > { %v1675_v12 = vpop.f32.mrf.mxu2  ;;  %v721_v17 = vpop.f32.mrf.mxu0 }
 0x19a   : > { %v1789_v13 = vadd.f32 %v1675_v12, %v1162_v9  ;;  %v1164_v19 = vpop.f32.mrf.mxu1 }
 0x19b   : > { %v1165_v28 = vadd.f32 %v1164_v19, %v721_v17 }
 0x19c   : > { %v3092_v24 = vpack.c.bf16 %v1789_v13, %v1788_v62  ;;  %v1980_v25 = vadd.f32 %v1979_v3, %v1789_v13  ;;  %v2051_v26 = vmul.f32 %v1789_v13, %v1789_v13 }
 0x19e   : > { %3188 = vst [vmem:[%s3383_s18 + $0x78] sm:$0xff] %v3092_v24   ;;  %v2114_v27 = vadd.f32 %v2113_v8, %v2051_v26  ;;  %v1212_v26 = vadd.f32 %v3496_v45, %v3392_v23 }
 0x19f   : > { %v1718_v29 = vpop.f32.mrf.mxu3 }
 0x1a0   : > { %v3581_v53 = vadd.f32 %v1718_v29, %v1205_v44 }
 0x1a1   : > { %v1678_v30 = vpop.f32.mrf.mxu2  ;;  %v723_v36 = vpop.f32.mrf.mxu0 }
 0x1a2   : > { %v1790_v33 = vadd.f32 %v1678_v30, %v1165_v28  ;;  %v1166_v38 = vpop.f32.mrf.mxu1 }
 0x1a3   : > { %v1167_v51 = vadd.f32 %v1166_v38, %v723_v36 }
 0x1a4   : > { %v1981_v40 = vadd.f32 %v1980_v25, %v1790_v33  ;;  %v2052_v41 = vmul.f32 %v1790_v33, %v1790_v33  ;;  %v1210_v25 = vadd.f32 %v3494_v34, %v3390_v14 }
 0x1a6   : > { %v2115_v43 = vadd.f32 %v2114_v27, %v2052_v41 }
 0x1a7   : > { %v1720_v52 = vpop.f32.mrf.mxu3 }
 0x1a8   : > { %v3583_v55 = vadd.f32 %v1720_v52, %v1207_v47 }
 0x1a9   : > { %v1680_v54 = vpop.f32.mrf.mxu2  ;;  %v726_v62 = vpop.f32.mrf.mxu0 }
 0x1aa   : > { %v1791_v60 = vadd.f32 %v1680_v54, %v1167_v51  ;;  %v3137_v0 = vpack.c.bf16 %v3583_v55, %v3581_v53  ;;  %v1169_v1 = vpop.f32.mrf.mxu1  ;;  %v1215_v54 = vadd.f32 %v3507_v2, %v3403_v37 }
 0x1ab   : > { %v1170_v63 = vadd.f32 %v1169_v1, %v726_v62 }
 0x1ac   : > { %v3097_v3 = vpack.c.bf16 %v1791_v60, %v1790_v33  ;;  %v1982_v5 = vadd.f32 %v1981_v40, %v1791_v60  ;;  %v2053_v8 = vmul.f32 %v1791_v60, %v1791_v60  ;;  %3197 = vst [vmem:[%s3383_s18 + $0xc0] sm:$0xff] %v3137_v0   ;;  %v1217_v60 = vadd.f32 %v3509_v15, %v3405_v46 }
 0x1ae   : > { %3189 = vst [vmem:[%s3383_s18 + $0x80] sm:$0xff] %v3097_v3   ;;  %v2116_v56 = vadd.f32 %v2115_v43, %v2053_v8 }
 0x1af   : > { %v1723_v4 = vpop.f32.mrf.mxu3 }
 0x1b0   : > { %v3593_v29 = vadd.f32 %v1723_v4, %v1210_v25 }
 0x1b1   : > { %v1683_v16 = vpop.f32.mrf.mxu2  ;;  %v728_v12 = vpop.f32.mrf.mxu0 }
 0x1b2   : > { %v1792_v9 = vadd.f32 %v1683_v16, %v1170_v63  ;;  %v1171_v13 = vpop.f32.mrf.mxu1 }
 0x1b3   : > { %v1172_v27 = vadd.f32 %v1171_v13, %v728_v12  ;;  %v1220_v13 = vadd.f32 %v3520_v35, %v3416_v61 }
 0x1b4   : > { %v1983_v17 = vadd.f32 %v1982_v5, %v1792_v9  ;;  %v2054_v19 = vmul.f32 %v1792_v9, %v1792_v9 }
 0x1b6   : > { %v2117_v24 = vadd.f32 %v2116_v56, %v2054_v19 }
 0x1b7   : > { %v1725_v28 = vpop.f32.mrf.mxu3 }
 0x1b8   : > { %v3595_v33 = vadd.f32 %v1725_v28, %v1212_v26 }
 0x1b9   : > { %v1685_v30 = vpop.f32.mrf.mxu2  ;;  %v731_v38 = vpop.f32.mrf.mxu0 }
 0x1ba   : > { %v1793_v36 = vadd.f32 %v1685_v30, %v1172_v27  ;;  %v3142_v40 = vpack.c.bf16 %v3595_v33, %v3593_v29  ;;  %v1174_v41 = vpop.f32.mrf.mxu1 }
 0x1bb   : > { %v1175_v52 = vadd.f32 %v1174_v41, %v731_v38 }
 0x1bc   : > { %v3102_v43 = vpack.c.bf16 %v1793_v36, %v1792_v9  ;;  %v3599_v44 = vadd.f32 %v1983_v17, %v1793_v36  ;;  %v2055_v14 = vmul.f32 %v1793_v36, %v1793_v36  ;;  %3198 = vst [vmem:[%s3383_s18 + $0xc8] sm:$0xff] %v3142_v40   ;;  %v1222_v17 = vadd.f32 %v3522_v49, %v3418_v7 }
 0x1be   : > { %3190 = vst [vmem:[%s3383_s18 + $0x88] sm:$0xff] %v3102_v43   ;;  %v3603_v23 = vadd.f32 %v2117_v24, %v2055_v14  ;;  %v1225_v14 = vadd.f32 %v3533_v6, %v3429_v22 }
 0x1bf   : > { %v1728_v34 = vpop.f32.mrf.mxu3 }
 0x1c0   : > { %v3609_v1 = vadd.f32 %v1728_v34, %v1215_v54  ;;  %v1227_v34 = vadd.f32 %v3535_v20, %v3431_v32 }
 0x1c1   : > { %v1688_v45 = vpop.f32.mrf.mxu2  ;;  %v733_v47 = vpop.f32.mrf.mxu0 }
 0x1c2   : > { %v1176_v51 = vpop.f32.mrf.mxu1  ;;  %v3613_v8 = vadd.f32 %v1688_v45, %v1175_v52 }
 0x1c3   : > { %v1177_v62 = vadd.f32 %v1176_v51, %v733_v47 }
 0x1c7   : > { %v1730_v0 = vpop.f32.mrf.mxu3 }
 0x1c8   : > { %v3611_v5 = vadd.f32 %v1730_v0, %v1217_v60 }
 0x1c9   : > { %v1690_v3 = vpop.f32.mrf.mxu2  ;;  %v736_v63 = vpop.f32.mrf.mxu0 }
 0x1ca   : > { %v3615_v56 = vadd.f32 %v1690_v3, %v1177_v62  ;;  %v3147_v4 = vpack.c.bf16 %v3611_v5, %v3609_v1  ;;  %v1179_v16 = vpop.f32.mrf.mxu1 }
 0x1cb   : > { %v1180_v12 = vadd.f32 %v1179_v16, %v736_v63 }
 0x1cc   : > { %v3107_v37 = vpack.c.bf16 %v3615_v56, %v3613_v8  ;;  %3199 = vst [vmem:[%s3383_s18 + $0xd0] sm:$0xff] %v3147_v4  }
 0x1ce   : > { %3191 = vst [vmem:[%s3383_s18 + $0x90] sm:$0xff] %v3107_v37   ;;  %v1230_v37 = vadd.f32 %v3546_v42, %v3442_v48 }
 0x1cf   : > { %v1733_v46 = vpop.f32.mrf.mxu3 }
 0x1d0   : > { %v3627_v25 = vadd.f32 %v1733_v46, %v1220_v13  ;;  %v1232_v46 = vadd.f32 %v3548_v57, %v3444_v58  ;;  %v2056_v57 = vmul.f32 %v3613_v8, %v3613_v8 }
 0x1d1   : > { %v1693_v2 = vpop.f32.mrf.mxu2  ;;  %v738_v15 = vpop.f32.mrf.mxu0 }
 0x1d2   : > { %v1181_v9 = vpop.f32.mrf.mxu1  ;;  %v3631_v28 = vadd.f32 %v1693_v2, %v1180_v12 }
 0x1d3   : > { %v1182_v19 = vadd.f32 %v1181_v9, %v738_v15 }
 0x1d7   : > { %v1735_v24 = vpop.f32.mrf.mxu3 }
 0x1d8   : > { %v3629_v27 = vadd.f32 %v1735_v24, %v1222_v17 }
 0x1d9   : > { %v1695_v26 = vpop.f32.mrf.mxu2  ;;  %v741_v36 = vpop.f32.mrf.mxu0 }
 0x1da   : > { %v3633_v30 = vadd.f32 %v1695_v26, %v1182_v19  ;;  %v3152_v38 = vpack.c.bf16 %v3629_v27, %v3627_v25  ;;  %v1184_v40 = vpop.f32.mrf.mxu1 }
 0x1db   : > { %v1185_v43 = vadd.f32 %v1184_v40, %v741_v36 }
 0x1dc   : > { %v3112_v61 = vpack.c.bf16 %v3633_v30, %v3631_v28  ;;  %3200 = vst [vmem:[%s3383_s18 + $0xd8] sm:$0xff] %v3152_v38  }
 0x1de   : > { %3192 = vst [vmem:[%s3383_s18 + $0x98] sm:$0xff] %v3112_v61   ;;  %v2057_v61 = vmul.f32 %v3615_v56, %v3615_v56 }
 0x1df   : > { %v1738_v7 = vpop.f32.mrf.mxu3 }
 0x1e0   : > { %v3645_v51 = vadd.f32 %v1738_v7, %v1225_v14  ;;  %v1985_v7 = vadd.f32 %v3599_v44, %v3613_v8 }
 0x1e1   : > { %v1698_v35 = vpop.f32.mrf.mxu2  ;;  %v743_v49 = vpop.f32.mrf.mxu0 }
 0x1e2   : > { %v1186_v41 = vpop.f32.mrf.mxu1  ;;  %v1798_v60 = vadd.f32 %v1698_v35, %v1185_v43  ;;  %v2119_v43 = vadd.f32 %v3603_v23, %v2056_v57  ;;  %v1986_v14 = vadd.f32 %v1985_v7, %v3615_v56  ;;  %v1240_v7 = vadd.f32 %v3572_v59, %v3468_v39 }
 0x1e3   : > { %v1187_v45 = vadd.f32 %v1186_v41, %v743_v49  ;;  %v1235_v49 = vadd.f32 %v3559_v18, %v3455_v11  ;;  %v1237_v41 = vadd.f32 %v3561_v31, %v3457_v21  ;;  %v2059_v21 = vmul.f32 %v3633_v30, %v3633_v30 }
 0x1e4   : > { %v1987_v11 = vadd.f32 %v1986_v14, %v3631_v28 }
 0x1e7   : > { %v1740_v47 = vpop.f32.mrf.mxu3 }
 0x1e8   : > { %v3647_v54 = vadd.f32 %v1740_v47, %v1227_v34  ;;  %v2058_v34 = vmul.f32 %v3631_v28, %v3631_v28 }
 0x1e9   : > { %v1700_v52 = vpop.f32.mrf.mxu2  ;;  %v746_v0 = vpop.f32.mrf.mxu0 }
 0x1ea   : > { %v3649_v62 = vadd.f32 %v1700_v52, %v1187_v45  ;;  %v3157_v3 = vpack.c.bf16 %v3647_v54, %v3645_v51  ;;  %v1189_v63 = vpop.f32.mrf.mxu1  ;;  %v2120_v52 = vadd.f32 %v2119_v43, %v2057_v61 }
 0x1eb   : > { %v1190_v16 = vadd.f32 %v1189_v63, %v746_v0 }
 0x1ec   : > { %v3117_v22 = vpack.c.bf16 %v3649_v62, %v1798_v60  ;;  %3201 = vst [vmem:[%s3383_s18 + $0xe0] sm:$0xff] %v3157_v3   ;;  %v2121_v63 = vadd.f32 %v2120_v52, %v2058_v34  ;;  %v2061_v28 = vmul.f32 %v3649_v62, %v3649_v62 }
 0x1ee   : > { %3193 = vst [vmem:[%s3383_s18 + $0xa0] sm:$0xff] %v3117_v22   ;;  %v1988_v22 = vadd.f32 %v1987_v11, %v3633_v30 }
 0x1ef   : > { %v1743_v32 = vpop.f32.mrf.mxu3 }
 0x1f0   : > { %v3660_v9 = vadd.f32 %v1743_v32, %v1230_v37  ;;  %v2060_v32 = vmul.f32 %v1798_v60, %v1798_v60 }
 0x1f1   : > { %v1703_v6 = vpop.f32.mrf.mxu2  ;;  %v748_v20 = vpop.f32.mrf.mxu0 }
 0x1f2   : > { %v1191_v4 = vpop.f32.mrf.mxu1  ;;  %v1800_v17 = vadd.f32 %v1703_v6, %v1190_v16 }
 0x1f3   : > { %v1192_v2 = vadd.f32 %v1191_v4, %v748_v20  ;;  %v2122_v20 = vadd.f32 %v2121_v63, %v2059_v21  ;;  %v1989_v4 = vadd.f32 %v1988_v22, %v1798_v60 }
 0x1f5   : > { %v2123_v16 = vadd.f32 %v2122_v20, %v2060_v32  ;;  %v1990_v37 = vadd.f32 %v1989_v4, %v3649_v62  ;;  %v1242_v62 = vadd.f32 %v3574_v10, %v3470_v50  ;;  %v2068_v50 = vmul.f32 %v3581_v53, %v3581_v53 }
 0x1f6   : > { %v2071_v32 = vmul.f32 %v3595_v33, %v3595_v33 }
 0x1f7   : > { %v1745_v15 = vpop.f32.mrf.mxu3 }
 0x1f8   : > { %v3662_v13 = vadd.f32 %v1745_v15, %v1232_v46  ;;  %v2062_v46 = vmul.f32 %v1800_v17, %v1800_v17 }
 0x1f9   : > { %v1705_v12 = vpop.f32.mrf.mxu2  ;;  %v751_v24 = vpop.f32.mrf.mxu0 }
 0x1fa   : > { %v1801_v19 = vadd.f32 %v1705_v12, %v1192_v2  ;;  %v3162_v26 = vpack.c.bf16 %v3662_v13, %v3660_v9  ;;  %v1194_v36 = vpop.f32.mrf.mxu1 }
 0x1fb   : > { %v1195_v35 = vadd.f32 %v1194_v36, %v751_v24  ;;  %v2124_v24 = vadd.f32 %v2123_v16, %v2061_v28 }
 0x1fc   : > { %v3122_v38 = vpack.c.bf16 %v1801_v19, %v1800_v17  ;;  %3202 = vst [vmem:[%s3383_s18 + $0xe8] sm:$0xff] %v3162_v26   ;;  %v1991_v26 = vadd.f32 %v1990_v37, %v1800_v17  ;;  %v2063_v36 = vmul.f32 %v1801_v19, %v1801_v19 }
 0x1fd   : > { %v2125_v30 = vadd.f32 %v2124_v24, %v2062_v46 }
 0x1fe   : > { %3194 = vst [vmem:[%s3383_s18 + $0xa8] sm:$0xff] %v3122_v38   ;;  %v1992_v38 = vadd.f32 %v1991_v26, %v1801_v19 }
 0x1ff   : > { %v1748_v48 = vpop.f32.mrf.mxu3  ;;  %v2126_v57 = vadd.f32 %v2125_v30, %v2063_v36 }
 0x200   : > { %v3682_v0 = vadd.f32 %v1748_v48, %v1235_v49 }
 0x201   : > { %v1708_v42 = vpop.f32.mrf.mxu2  ;;  %v753_v58 = vpop.f32.mrf.mxu0 }
 0x202   : > { %v1196_v40 = vpop.f32.mrf.mxu1  ;;  %v1802_v18 = vadd.f32 %v1708_v42, %v1195_v35 }
 0x203   : > { %v1197_v45 = vadd.f32 %v1196_v40, %v753_v58 }
 0x204   : > { %v2064_v48 = vmul.f32 %v1802_v18, %v1802_v18  ;;  %v1993_v40 = vadd.f32 %v1992_v38, %v1802_v18 }
 0x206   : > { %v2127_v35 = vadd.f32 %v2126_v57, %v2064_v48 }
 0x207   : > { %v1750_v47 = vpop.f32.mrf.mxu3 }
 0x208   : > { %v3684_v8 = vadd.f32 %v1750_v47, %v1237_v41 }
 0x209   : > { %v1710_v44 = vpop.f32.mrf.mxu2  ;;  %v756_v56 = vpop.f32.mrf.mxu0 }
 0x20a   : > { %v1803_v31 = vadd.f32 %v1710_v44, %v1197_v45  ;;  %v3167_v23 = vpack.c.bf16 %v3684_v8, %v3682_v0  ;;  %v1199_v3 = vpop.f32.mrf.mxu1 }
 0x20b   : > { %v1200_v2 = vadd.f32 %v1199_v3, %v756_v56  ;;  %v2070_v3 = vmul.f32 %v3593_v29, %v3593_v29 }
 0x20c   : > { %v3127_v6 = vpack.c.bf16 %v1803_v31, %v1802_v18  ;;  %3203 = vst [vmem:[%s3383_s18 + $0xf0] sm:$0xff] %v3167_v23   ;;  %v2065_v61 = vmul.f32 %v1803_v31, %v1803_v31  ;;  %v1994_v49 = vadd.f32 %v1993_v40, %v1803_v31  ;;  %v2069_v31 = vmul.f32 %v3583_v55, %v3583_v55 }
 0x20e   : > { %3195 = vst [vmem:[%s3383_s18 + $0xb0] sm:$0xff] %v3127_v6   ;;  %v2128_v45 = vadd.f32 %v2127_v35, %v2065_v61 }
 0x20f   : > { %v1753_v15 = vpop.f32.mrf.mxu3 }
 0x210   : > { %v1820_v43 = vadd.f32 %v1753_v15, %v1240_v7 }
 0x211   : > { %v1713_v12 = vpop.f32.mrf.mxu2  ;;  %v758_v58 = vpop.f32.mrf.mxu0 }
 0x212   : > { %v1804_v42 = vadd.f32 %v1713_v12, %v1200_v2  ;;  %v1201_v60 = vpop.f32.mrf.mxu1 }
 0x213   : > { %v1202_v41 = vadd.f32 %v1201_v60, %v758_v58 }
 0x214   : > { %v2066_v17 = vmul.f32 %v1804_v42, %v1804_v42  ;;  %v1995_v47 = vadd.f32 %v1994_v49, %v1804_v42 }
 0x216   : > { %v2129_v11 = vadd.f32 %v2128_v45, %v2066_v17 }
 0x217   : > { %v1755_v19 = vpop.f32.mrf.mxu3 }
 0x218   : > { %v1821_v34 = vadd.f32 %v1755_v19, %v1242_v62 }
 0x219   : > { %v1715_v14 = vpop.f32.mrf.mxu2 }
 0x21a   : > { %v1805_v52 = vadd.f32 %v1715_v14, %v1202_v41  ;;  %v3172_v44 = vpack.c.bf16 %v1821_v34, %v1820_v43 }
 0x21c   : > { %v3132_v21 = vpack.c.bf16 %v1805_v52, %v1804_v42  ;;  %v1996_v39 = vadd.f32 %v1995_v47, %v1805_v52  ;;  %v2067_v59 = vmul.f32 %v1805_v52, %v1805_v52  ;;  %3204 = vst [vmem:[%s3383_s18 + $0xf8] sm:$0xff] %v3172_v44  }
 0x21e   : > { %3196 = vst [vmem:[%s3383_s18 + $0xb8] sm:$0xff] %v3132_v21   ;;  %v1997_v10 = vadd.f32 %v1996_v39, %v3581_v53  ;;  %v2130_v18 = vadd.f32 %v2129_v11, %v2067_v59  ;;  %v2072_v53 = vmul.f32 %v3609_v1, %v3609_v1 }
 0x220   : > { %v1998_v23 = vadd.f32 %v1997_v10, %v3583_v55  ;;  %v2131_v56 = vadd.f32 %v2130_v18, %v2068_v50  ;;  %v2073_v55 = vmul.f32 %v3611_v5, %v3611_v5 }
 0x222   : > { %v1999_v63 = vadd.f32 %v1998_v23, %v3593_v29  ;;  %v2132_v22 = vadd.f32 %v2131_v56, %v2069_v31  ;;  %v2074_v29 = vmul.f32 %v3627_v25, %v3627_v25 }
 0x224   : > { %v2000_v6 = vadd.f32 %v1999_v63, %v3595_v33  ;;  %v2133_v20 = vadd.f32 %v2132_v22, %v2070_v3  ;;  %v2075_v33 = vmul.f32 %v3629_v27, %v3629_v27 }
 0x226   : > { %v2001_v4 = vadd.f32 %v2000_v6, %v3609_v1  ;;  %v2134_v28 = vadd.f32 %v2133_v20, %v2071_v32  ;;  %v2076_v1 = vmul.f32 %v3645_v51, %v3645_v51 }
 0x228   : > { %v2002_v16 = vadd.f32 %v2001_v4, %v3611_v5  ;;  %v2135_v37 = vadd.f32 %v2134_v28, %v2072_v53  ;;  %v2077_v5 = vmul.f32 %v3647_v54, %v3647_v54 }
 0x22a   : > { %v2003_v46 = vadd.f32 %v2002_v16, %v3627_v25  ;;  %v2136_v2 = vadd.f32 %v2135_v37, %v2073_v55  ;;  %v2078_v25 = vmul.f32 %v3660_v9, %v3660_v9 }
 0x22c   : > { %v2137_v15 = vadd.f32 %v2136_v2, %v2074_v29  ;;  %v2004_v12 = vadd.f32 %v2003_v46, %v3629_v27  ;;  %v2079_v27 = vmul.f32 %v3662_v13, %v3662_v13 }
 0x22e   : > { %v2005_v24 = vadd.f32 %v2004_v12, %v3645_v51  ;;  %v2138_v26 = vadd.f32 %v2137_v15, %v2075_v33  ;;  %v2080_v51 = vmul.f32 %v3682_v0, %v3682_v0 }
 0x230   : > { %v2006_v36 = vadd.f32 %v2005_v24, %v3647_v54  ;;  %v2139_v30 = vadd.f32 %v2138_v26, %v2076_v1  ;;  %v2081_v54 = vmul.f32 %v3684_v8, %v3684_v8 }
 0x232   : > { %v2007_v38 = vadd.f32 %v2006_v36, %v3660_v9  ;;  %v2140_v48 = vadd.f32 %v2139_v30, %v2077_v5  ;;  %v2082_v9 = vmul.f32 %v1820_v43, %v1820_v43 }
 0x234   : > { %v2008_v42 = vadd.f32 %v2007_v38, %v3662_v13  ;;  %v2141_v58 = vadd.f32 %v2140_v48, %v2078_v25  ;;  %v2083_v13 = vmul.f32 %v1821_v34, %v1821_v34 }
 0x236   : > { %v2009_v60 = vadd.f32 %v2008_v42, %v3682_v0  ;;  %v2142_v57 = vadd.f32 %v2141_v58, %v2079_v27 }
 0x238   : > { %v2010_v40 = vadd.f32 %v2009_v60, %v3684_v8  ;;  %v2143_v61 = vadd.f32 %v2142_v57, %v2080_v51 }
 0x23a   : > { %v2011_v7 = vadd.f32 %v2010_v40, %v1820_v43  ;;  %v2144_v62 = vadd.f32 %v2143_v61, %v2081_v54 }
 0x23c   : > { %v2012_v35 = vadd.f32 %v2011_v7, %v1821_v34  ;;  %v2145_v49 = vadd.f32 %v2144_v62, %v2082_v9 }
 0x23e   : > { %v2013_v17 = vrot.slane %v2012_v35, 4  ;;  %v2146_v41 = vadd.f32 %v2145_v49, %v2083_v13 }
 0x240   : > { %v2014_v19 = vadd.f32 %v2013_v17, %v2012_v35  ;;  %v2147_v14 = vrot.slane %v2146_v41, 4 }
 0x242   : > { %v2015_v0 = vrot.slane %v2014_v19, 2  ;;  %v2148_v45 = vadd.f32 %v2147_v14, %v2146_v41 }
 0x244   : > { %v2016_v47 = vadd.f32 %v2015_v0, %v2014_v19  ;;  %v2149_v52 = vrot.slane %v2148_v45, 2 }
 0x246   : > { %v2017_v44 = vrot.slane %v2016_v47, 1  ;;  %v2150_v11 = vadd.f32 %v2149_v52, %v2148_v45 }
 0x248   : > { %v2018_v8 = vadd.f32 %v2017_v44, %v2016_v47  ;;  %v2151_v43 = vrot.slane %v2150_v11, 1 }
 0x24a   : > { %2019 = vst [vmem:[%s211_s21] sm:$0x1] %v2018_v8  ;;  %v2152_v34 = vadd.f32 %v2151_v43, %v2150_v11 }
 0x24c   : > { %2153 = vst [vmem:[%s214_s24] sm:$0x1] %v2152_v34 }
 0x24d PF: > { %s15_s15 = sadd.s32 1, %s3229_s15  }
 0x24e   : > { %p12_p4 = scmp.ge.s32.totalorder %s15_s15, 4  }
 0x250   :  { %14 = sbr.rel (!%p12_p4) target bundleno = 1 (0x1), region = 86 }

// kernel: conv3d_block.3
= control target key start
LH: loop header
LB: loop body
LE: loop exit
PB: predicated region body
PF: predicated region fallthrough
CT: control target
= control target key end

     0   :  { %s1989_s0 = inlined_call_operand.vmem [shape: bf16[2,512,128], index: 0, kind: input, shape index: {}]   ;;  %s1990_s1 = inlined_call_operand.vmem [shape: f32[1,1,128], index: 1, kind: input, shape index: {}]   ;;  %s1991_s2 = inlined_call_operand.vmem [shape: f32[1,1,128], index: 2, kind: input, shape index: {}]   ;;  %s1992_s3 = inlined_call_operand.vmem [shape: f32[2,512,128], index: 3, kind: output, shape index: {}]  }
   0x1   :  { %v795_v0 = vld [vmem:[%s1989_s0] sm:$0xff]   ;;  %v1050_v5 = vld [vmem:[%s1989_s0 + $0x8] sm:$0xff]   ;;  %v1051_v8 = vld [vmem:[%s1989_s0 + $0x10] sm:$0xff]  }
   0x2   :  { %v1143_v1 = vld [vmem:[%s1990_s1] ss:$0 sm:$0xff]  ;;  %v796_v2 = vunpack.c.l.bf16 %v795_v0  ;;  %v797_v4 = vunpack.c.h.bf16 %v795_v0  ;;  %v800_v6 = vunpack.c.l.bf16 %v1050_v5  ;;  %v801_v7 = vunpack.c.h.bf16 %v1050_v5  ;;  %v1052_v9 = vld [vmem:[%s1989_s0 + $0x18] sm:$0xff]   ;;  %v1054_v31 = vld [vmem:[%s1989_s0 + $0x28] sm:$0xff]  }
   0x3   :  { %v1148_v3 = vld [vmem:[%s1991_s2] ss:$0 sm:$0xff]  ;;  %v804_v12 = vunpack.c.l.bf16 %v1051_v8  ;;  %v805_v13 = vunpack.c.h.bf16 %v1051_v8  ;;  %v808_v16 = vunpack.c.l.bf16 %v1052_v9  ;;  %v809_v17 = vunpack.c.h.bf16 %v1052_v9  ;;  %v1055_v36 = vld [vmem:[%s1989_s0 + $0x30] sm:$0xff]   ;;  %v1056_v41 = vld [vmem:[%s1989_s0 + $0x38] sm:$0xff]  }
   0x4   :  { %v274_v10 = vmul.f32 %v1143_v1, %v796_v2  ;;  %v275_v11 = vmul.f32 %v1143_v1, %v797_v4  ;;  %v276_v14 = vmul.f32 %v1143_v1, %v800_v6  ;;  %v277_v15 = vmul.f32 %v1143_v1, %v801_v7  ;;  %v1053_v26 = vld [vmem:[%s1989_s0 + $0x20] sm:$0xff]   ;;  %v1058_v5 = vld [vmem:[%s1989_s0 + $0x48] sm:$0xff]  }
   0x5   :  { %v278_v20 = vmul.f32 %v1143_v1, %v804_v12  ;;  %v279_v21 = vmul.f32 %v1143_v1, %v805_v13  ;;  %v280_v24 = vmul.f32 %v1143_v1, %v808_v16  ;;  %v281_v25 = vmul.f32 %v1143_v1, %v809_v17  ;;  %v1057_v62 = vld [vmem:[%s1989_s0 + $0x40] sm:$0xff]  }
   0x6   :  { %v406_v18 = vadd.f32 %v1148_v3, %v274_v10  ;;  %v407_v19 = vadd.f32 %v1148_v3, %v275_v11  ;;  %v408_v22 = vadd.f32 %v1148_v3, %v276_v14  ;;  %v409_v23 = vadd.f32 %v1148_v3, %v277_v15  ;;  %v1059_v10 = vld [vmem:[%s1989_s0 + $0x50] sm:$0xff]   ;;  %v1060_v15 = vld [vmem:[%s1989_s0 + $0x58] sm:$0xff]  }
   0x7   :  { %v410_v29 = vadd.f32 %v1148_v3, %v278_v20  ;;  %v411_v30 = vadd.f32 %v1148_v3, %v279_v21  ;;  %v412_v34 = vadd.f32 %v1148_v3, %v280_v24  ;;  %v413_v35 = vadd.f32 %v1148_v3, %v281_v25 }
   0x8   :  { %v534_v27 = vmax.f32 %v406_v18, 0.0  ;;  %v535_v28 = vmax.f32 %v407_v19, 0.0  ;;  %v536_v32 = vmax.f32 %v408_v22, 0.0  ;;  %v537_v33 = vmax.f32 %v409_v23, 0.0 }
   0x9   :  { %v538_v37 = vmax.f32 %v410_v29, 0.0  ;;  %v539_v38 = vmax.f32 %v411_v30, 0.0  ;;  %v812_v39 = vunpack.c.l.bf16 %v1053_v26  ;;  %v813_v40 = vunpack.c.h.bf16 %v1053_v26 }
   0xa   :  { %662 = vst [vmem:[%s1992_s3] sm:$0xff] %v534_v27  ;;  %v540_v42 = vmax.f32 %v412_v34, 0.0  ;;  %v541_v43 = vmax.f32 %v413_v35, 0.0  ;;  %v816_v44 = vunpack.c.l.bf16 %v1054_v31  ;;  %v817_v45 = vunpack.c.h.bf16 %v1054_v31 }
   0xb   :  { %663 = vst [vmem:[%s1992_s3 + $0x8] sm:$0xff] %v535_v28  ;;  %v282_v46 = vmul.f32 %v1143_v1, %v812_v39  ;;  %v283_v47 = vmul.f32 %v1143_v1, %v813_v40  ;;  %v820_v48 = vunpack.c.l.bf16 %v1055_v36  ;;  %v821_v49 = vunpack.c.h.bf16 %v1055_v36  ;;  %v1061_v36 = vld [vmem:[%s1989_s0 + $0x60] sm:$0xff]  }
   0xc   :  { %664 = vst [vmem:[%s1992_s3 + $0x10] sm:$0xff] %v536_v32  ;;  %v284_v50 = vmul.f32 %v1143_v1, %v816_v44  ;;  %v285_v51 = vmul.f32 %v1143_v1, %v817_v45  ;;  %v824_v52 = vunpack.c.l.bf16 %v1056_v41  ;;  %v825_v53 = vunpack.c.h.bf16 %v1056_v41  ;;  %v1062_v41 = vld [vmem:[%s1989_s0 + $0x68] sm:$0xff]  }
   0xd   :  { %665 = vst [vmem:[%s1992_s3 + $0x18] sm:$0xff] %v537_v33  ;;  %v414_v54 = vadd.f32 %v1148_v3, %v282_v46  ;;  %v415_v55 = vadd.f32 %v1148_v3, %v283_v47  ;;  %v286_v56 = vmul.f32 %v1143_v1, %v820_v48  ;;  %v287_v57 = vmul.f32 %v1143_v1, %v821_v49  ;;  %v1063_v46 = vld [vmem:[%s1989_s0 + $0x70] sm:$0xff]  }
   0xe   :  { %666 = vst [vmem:[%s1992_s3 + $0x20] sm:$0xff] %v538_v37  ;;  %v416_v58 = vadd.f32 %v1148_v3, %v284_v50  ;;  %v417_v59 = vadd.f32 %v1148_v3, %v285_v51  ;;  %v288_v60 = vmul.f32 %v1143_v1, %v824_v52  ;;  %v289_v61 = vmul.f32 %v1143_v1, %v825_v53  ;;  %v1064_v51 = vld [vmem:[%s1989_s0 + $0x78] sm:$0xff]  }
   0xf   :  { %667 = vst [vmem:[%s1992_s3 + $0x28] sm:$0xff] %v539_v38  ;;  %v542_v63 = vmax.f32 %v414_v54, 0.0  ;;  %v543_v0 = vmax.f32 %v415_v55, 0.0  ;;  %v418_v2 = vadd.f32 %v1148_v3, %v286_v56  ;;  %v419_v4 = vadd.f32 %v1148_v3, %v287_v57 }
  0x10   :  { %668 = vst [vmem:[%s1992_s3 + $0x30] sm:$0xff] %v540_v42  ;;  %v544_v6 = vmax.f32 %v416_v58, 0.0  ;;  %v545_v7 = vmax.f32 %v417_v59, 0.0  ;;  %v420_v8 = vadd.f32 %v1148_v3, %v288_v60  ;;  %v421_v9 = vadd.f32 %v1148_v3, %v289_v61 }
  0x11   :  { %669 = vst [vmem:[%s1992_s3 + $0x38] sm:$0xff] %v541_v43  ;;  %v546_v11 = vmax.f32 %v418_v2, 0.0  ;;  %v547_v12 = vmax.f32 %v419_v4, 0.0  ;;  %v828_v13 = vunpack.c.l.bf16 %v1057_v62  ;;  %v829_v14 = vunpack.c.h.bf16 %v1057_v62 }
  0x12   :  { %670 = vst [vmem:[%s1992_s3 + $0x40] sm:$0xff] %v542_v63  ;;  %v548_v16 = vmax.f32 %v420_v8, 0.0  ;;  %v549_v17 = vmax.f32 %v421_v9, 0.0  ;;  %v832_v18 = vunpack.c.l.bf16 %v1058_v5  ;;  %v833_v19 = vunpack.c.h.bf16 %v1058_v5 }
  0x13   :  { %671 = vst [vmem:[%s1992_s3 + $0x48] sm:$0xff] %v543_v0  ;;  %v290_v20 = vmul.f32 %v1143_v1, %v828_v13  ;;  %v291_v21 = vmul.f32 %v1143_v1, %v829_v14  ;;  %v836_v22 = vunpack.c.l.bf16 %v1059_v10  ;;  %v837_v23 = vunpack.c.h.bf16 %v1059_v10  ;;  %v1065_v10 = vld [vmem:[%s1989_s0 + $0x80] sm:$0xff]  }
  0x14   :  { %672 = vst [vmem:[%s1992_s3 + $0x50] sm:$0xff] %v544_v6  ;;  %v292_v24 = vmul.f32 %v1143_v1, %v832_v18  ;;  %v293_v25 = vmul.f32 %v1143_v1, %v833_v19  ;;  %v840_v26 = vunpack.c.l.bf16 %v1060_v15  ;;  %v841_v27 = vunpack.c.h.bf16 %v1060_v15  ;;  %v1066_v15 = vld [vmem:[%s1989_s0 + $0x88] sm:$0xff]  }
  0x15   :  { %673 = vst [vmem:[%s1992_s3 + $0x58] sm:$0xff] %v545_v7  ;;  %v422_v28 = vadd.f32 %v1148_v3, %v290_v20  ;;  %v423_v29 = vadd.f32 %v1148_v3, %v291_v21  ;;  %v294_v30 = vmul.f32 %v1143_v1, %v836_v22  ;;  %v295_v31 = vmul.f32 %v1143_v1, %v837_v23  ;;  %v1067_v20 = vld [vmem:[%s1989_s0 + $0x90] sm:$0xff]  }
  0x16   :  { %674 = vst [vmem:[%s1992_s3 + $0x60] sm:$0xff] %v546_v11  ;;  %v424_v32 = vadd.f32 %v1148_v3, %v292_v24  ;;  %v425_v33 = vadd.f32 %v1148_v3, %v293_v25  ;;  %v296_v34 = vmul.f32 %v1143_v1, %v840_v26  ;;  %v297_v35 = vmul.f32 %v1143_v1, %v841_v27  ;;  %v1068_v25 = vld [vmem:[%s1989_s0 + $0x98] sm:$0xff]  }
  0x17   :  { %675 = vst [vmem:[%s1992_s3 + $0x68] sm:$0xff] %v547_v12  ;;  %v550_v37 = vmax.f32 %v422_v28, 0.0  ;;  %v551_v38 = vmax.f32 %v423_v29, 0.0  ;;  %v426_v39 = vadd.f32 %v1148_v3, %v294_v30  ;;  %v427_v40 = vadd.f32 %v1148_v3, %v295_v31 }
  0x18   :  { %676 = vst [vmem:[%s1992_s3 + $0x70] sm:$0xff] %v548_v16  ;;  %v552_v42 = vmax.f32 %v424_v32, 0.0  ;;  %v553_v43 = vmax.f32 %v425_v33, 0.0  ;;  %v428_v44 = vadd.f32 %v1148_v3, %v296_v34  ;;  %v429_v45 = vadd.f32 %v1148_v3, %v297_v35 }
  0x19   :  { %677 = vst [vmem:[%s1992_s3 + $0x78] sm:$0xff] %v549_v17  ;;  %v554_v47 = vmax.f32 %v426_v39, 0.0  ;;  %v555_v48 = vmax.f32 %v427_v40, 0.0  ;;  %v844_v49 = vunpack.c.l.bf16 %v1061_v36  ;;  %v845_v50 = vunpack.c.h.bf16 %v1061_v36 }
  0x1a   :  { %678 = vst [vmem:[%s1992_s3 + $0x80] sm:$0xff] %v550_v37  ;;  %v556_v52 = vmax.f32 %v428_v44, 0.0  ;;  %v557_v53 = vmax.f32 %v429_v45, 0.0  ;;  %v848_v54 = vunpack.c.l.bf16 %v1062_v41  ;;  %v849_v55 = vunpack.c.h.bf16 %v1062_v41 }
  0x1b   :  { %679 = vst [vmem:[%s1992_s3 + $0x88] sm:$0xff] %v551_v38  ;;  %v298_v56 = vmul.f32 %v1143_v1, %v844_v49  ;;  %v299_v57 = vmul.f32 %v1143_v1, %v845_v50  ;;  %v852_v58 = vunpack.c.l.bf16 %v1063_v46  ;;  %v853_v59 = vunpack.c.h.bf16 %v1063_v46  ;;  %v1069_v46 = vld [vmem:[%s1989_s0 + $0xa0] sm:$0xff]  }
  0x1c   :  { %680 = vst [vmem:[%s1992_s3 + $0x90] sm:$0xff] %v552_v42  ;;  %v300_v60 = vmul.f32 %v1143_v1, %v848_v54  ;;  %v301_v61 = vmul.f32 %v1143_v1, %v849_v55  ;;  %v856_v62 = vunpack.c.l.bf16 %v1064_v51  ;;  %v857_v63 = vunpack.c.h.bf16 %v1064_v51  ;;  %v1070_v51 = vld [vmem:[%s1989_s0 + $0xa8] sm:$0xff]  }
  0x1d   :  { %681 = vst [vmem:[%s1992_s3 + $0x98] sm:$0xff] %v553_v43  ;;  %v430_v0 = vadd.f32 %v1148_v3, %v298_v56  ;;  %v431_v2 = vadd.f32 %v1148_v3, %v299_v57  ;;  %v302_v4 = vmul.f32 %v1143_v1, %v852_v58  ;;  %v303_v5 = vmul.f32 %v1143_v1, %v853_v59  ;;  %v1071_v56 = vld [vmem:[%s1989_s0 + $0xb0] sm:$0xff]  }
  0x1e   :  { %682 = vst [vmem:[%s1992_s3 + $0xa0] sm:$0xff] %v554_v47  ;;  %v432_v6 = vadd.f32 %v1148_v3, %v300_v60  ;;  %v433_v7 = vadd.f32 %v1148_v3, %v301_v61  ;;  %v304_v8 = vmul.f32 %v1143_v1, %v856_v62  ;;  %v305_v9 = vmul.f32 %v1143_v1, %v857_v63  ;;  %v1072_v61 = vld [vmem:[%s1989_s0 + $0xb8] sm:$0xff]  }
  0x1f   :  { %683 = vst [vmem:[%s1992_s3 + $0xa8] sm:$0xff] %v555_v48  ;;  %v558_v11 = vmax.f32 %v430_v0, 0.0  ;;  %v559_v12 = vmax.f32 %v431_v2, 0.0  ;;  %v434_v13 = vadd.f32 %v1148_v3, %v302_v4  ;;  %v435_v14 = vadd.f32 %v1148_v3, %v303_v5 }
  0x20   :  { %684 = vst [vmem:[%s1992_s3 + $0xb0] sm:$0xff] %v556_v52  ;;  %v560_v16 = vmax.f32 %v432_v6, 0.0  ;;  %v561_v17 = vmax.f32 %v433_v7, 0.0  ;;  %v436_v18 = vadd.f32 %v1148_v3, %v304_v8  ;;  %v437_v19 = vadd.f32 %v1148_v3, %v305_v9 }
  0x21   :  { %685 = vst [vmem:[%s1992_s3 + $0xb8] sm:$0xff] %v557_v53  ;;  %v562_v21 = vmax.f32 %v434_v13, 0.0  ;;  %v563_v22 = vmax.f32 %v435_v14, 0.0  ;;  %v860_v23 = vunpack.c.l.bf16 %v1065_v10  ;;  %v861_v24 = vunpack.c.h.bf16 %v1065_v10 }
  0x22   :  { %686 = vst [vmem:[%s1992_s3 + $0xc0] sm:$0xff] %v558_v11  ;;  %v564_v26 = vmax.f32 %v436_v18, 0.0  ;;  %v565_v27 = vmax.f32 %v437_v19, 0.0  ;;  %v864_v28 = vunpack.c.l.bf16 %v1066_v15  ;;  %v865_v29 = vunpack.c.h.bf16 %v1066_v15 }
  0x23   :  { %687 = vst [vmem:[%s1992_s3 + $0xc8] sm:$0xff] %v559_v12  ;;  %v306_v30 = vmul.f32 %v1143_v1, %v860_v23  ;;  %v307_v31 = vmul.f32 %v1143_v1, %v861_v24  ;;  %v868_v32 = vunpack.c.l.bf16 %v1067_v20  ;;  %v869_v33 = vunpack.c.h.bf16 %v1067_v20  ;;  %v1073_v20 = vld [vmem:[%s1989_s0 + $0xc0] sm:$0xff]  }
  0x24   :  { %688 = vst [vmem:[%s1992_s3 + $0xd0] sm:$0xff] %v560_v16  ;;  %v308_v34 = vmul.f32 %v1143_v1, %v864_v28  ;;  %v309_v35 = vmul.f32 %v1143_v1, %v865_v29  ;;  %v872_v36 = vunpack.c.l.bf16 %v1068_v25  ;;  %v873_v37 = vunpack.c.h.bf16 %v1068_v25  ;;  %v1074_v25 = vld [vmem:[%s1989_s0 + $0xc8] sm:$0xff]  }
  0x25   :  { %689 = vst [vmem:[%s1992_s3 + $0xd8] sm:$0xff] %v561_v17  ;;  %v438_v38 = vadd.f32 %v1148_v3, %v306_v30  ;;  %v439_v39 = vadd.f32 %v1148_v3, %v307_v31  ;;  %v310_v40 = vmul.f32 %v1143_v1, %v868_v32  ;;  %v311_v41 = vmul.f32 %v1143_v1, %v869_v33  ;;  %v1075_v30 = vld [vmem:[%s1989_s0 + $0xd0] sm:$0xff]  }
  0x26   :  { %690 = vst [vmem:[%s1992_s3 + $0xe0] sm:$0xff] %v562_v21  ;;  %v440_v42 = vadd.f32 %v1148_v3, %v308_v34  ;;  %v441_v43 = vadd.f32 %v1148_v3, %v309_v35  ;;  %v312_v44 = vmul.f32 %v1143_v1, %v872_v36  ;;  %v313_v45 = vmul.f32 %v1143_v1, %v873_v37  ;;  %v1076_v35 = vld [vmem:[%s1989_s0 + $0xd8] sm:$0xff]  }
  0x27   :  { %691 = vst [vmem:[%s1992_s3 + $0xe8] sm:$0xff] %v563_v22  ;;  %v566_v47 = vmax.f32 %v438_v38, 0.0  ;;  %v567_v48 = vmax.f32 %v439_v39, 0.0  ;;  %v442_v49 = vadd.f32 %v1148_v3, %v310_v40  ;;  %v443_v50 = vadd.f32 %v1148_v3, %v311_v41 }
  0x28   :  { %692 = vst [vmem:[%s1992_s3 + $0xf0] sm:$0xff] %v564_v26  ;;  %v568_v52 = vmax.f32 %v440_v42, 0.0  ;;  %v569_v53 = vmax.f32 %v441_v43, 0.0  ;;  %v444_v54 = vadd.f32 %v1148_v3, %v312_v44  ;;  %v445_v55 = vadd.f32 %v1148_v3, %v313_v45 }
  0x29   :  { %693 = vst [vmem:[%s1992_s3 + $0xf8] sm:$0xff] %v565_v27  ;;  %v570_v57 = vmax.f32 %v442_v49, 0.0  ;;  %v571_v58 = vmax.f32 %v443_v50, 0.0  ;;  %v876_v59 = vunpack.c.l.bf16 %v1069_v46  ;;  %v877_v60 = vunpack.c.h.bf16 %v1069_v46 }
  0x2a   :  { %694 = vst [vmem:[%s1992_s3 + $0x100] sm:$0xff] %v566_v47  ;;  %v572_v62 = vmax.f32 %v444_v54, 0.0  ;;  %v573_v63 = vmax.f32 %v445_v55, 0.0  ;;  %v880_v0 = vunpack.c.l.bf16 %v1070_v51  ;;  %v881_v2 = vunpack.c.h.bf16 %v1070_v51 }
  0x2b   :  { %695 = vst [vmem:[%s1992_s3 + $0x108] sm:$0xff] %v567_v48  ;;  %v314_v4 = vmul.f32 %v1143_v1, %v876_v59  ;;  %v315_v5 = vmul.f32 %v1143_v1, %v877_v60  ;;  %v884_v6 = vunpack.c.l.bf16 %v1071_v56  ;;  %v885_v7 = vunpack.c.h.bf16 %v1071_v56  ;;  %v1077_v56 = vld [vmem:[%s1989_s0 + $0xe0] sm:$0xff]  }
  0x2c   :  { %696 = vst [vmem:[%s1992_s3 + $0x110] sm:$0xff] %v568_v52  ;;  %v316_v8 = vmul.f32 %v1143_v1, %v880_v0  ;;  %v317_v9 = vmul.f32 %v1143_v1, %v881_v2  ;;  %v888_v10 = vunpack.c.l.bf16 %v1072_v61  ;;  %v889_v11 = vunpack.c.h.bf16 %v1072_v61  ;;  %v1078_v61 = vld [vmem:[%s1989_s0 + $0xe8] sm:$0xff]  }
  0x2d   :  { %697 = vst [vmem:[%s1992_s3 + $0x118] sm:$0xff] %v569_v53  ;;  %v446_v12 = vadd.f32 %v1148_v3, %v314_v4  ;;  %v447_v13 = vadd.f32 %v1148_v3, %v315_v5  ;;  %v318_v14 = vmul.f32 %v1143_v1, %v884_v6  ;;  %v319_v15 = vmul.f32 %v1143_v1, %v885_v7  ;;  %v1079_v4 = vld [vmem:[%s1989_s0 + $0xf0] sm:$0xff]  }
  0x2e   :  { %698 = vst [vmem:[%s1992_s3 + $0x120] sm:$0xff] %v570_v57  ;;  %v448_v16 = vadd.f32 %v1148_v3, %v316_v8  ;;  %v449_v17 = vadd.f32 %v1148_v3, %v317_v9  ;;  %v320_v18 = vmul.f32 %v1143_v1, %v888_v10  ;;  %v321_v19 = vmul.f32 %v1143_v1, %v889_v11  ;;  %v1080_v9 = vld [vmem:[%s1989_s0 + $0xf8] sm:$0xff]  }
  0x2f   :  { %699 = vst [vmem:[%s1992_s3 + $0x128] sm:$0xff] %v571_v58  ;;  %v574_v21 = vmax.f32 %v446_v12, 0.0  ;;  %v575_v22 = vmax.f32 %v447_v13, 0.0  ;;  %v450_v23 = vadd.f32 %v1148_v3, %v318_v14  ;;  %v451_v24 = vadd.f32 %v1148_v3, %v319_v15 }
  0x30   :  { %700 = vst [vmem:[%s1992_s3 + $0x130] sm:$0xff] %v572_v62  ;;  %v576_v26 = vmax.f32 %v448_v16, 0.0  ;;  %v577_v27 = vmax.f32 %v449_v17, 0.0  ;;  %v452_v28 = vadd.f32 %v1148_v3, %v320_v18  ;;  %v453_v29 = vadd.f32 %v1148_v3, %v321_v19 }
  0x31   :  { %701 = vst [vmem:[%s1992_s3 + $0x138] sm:$0xff] %v573_v63  ;;  %v578_v31 = vmax.f32 %v450_v23, 0.0  ;;  %v579_v32 = vmax.f32 %v451_v24, 0.0  ;;  %v892_v33 = vunpack.c.l.bf16 %v1073_v20  ;;  %v893_v34 = vunpack.c.h.bf16 %v1073_v20 }
  0x32   :  { %702 = vst [vmem:[%s1992_s3 + $0x140] sm:$0xff] %v574_v21  ;;  %v580_v36 = vmax.f32 %v452_v28, 0.0  ;;  %v581_v37 = vmax.f32 %v453_v29, 0.0  ;;  %v896_v38 = vunpack.c.l.bf16 %v1074_v25  ;;  %v897_v39 = vunpack.c.h.bf16 %v1074_v25 }
  0x33   :  { %703 = vst [vmem:[%s1992_s3 + $0x148] sm:$0xff] %v575_v22  ;;  %v322_v40 = vmul.f32 %v1143_v1, %v892_v33  ;;  %v323_v41 = vmul.f32 %v1143_v1, %v893_v34  ;;  %v900_v42 = vunpack.c.l.bf16 %v1075_v30  ;;  %v901_v43 = vunpack.c.h.bf16 %v1075_v30  ;;  %v1081_v30 = vld [vmem:[%s1989_s0 + $0x100] sm:$0xff]  }
  0x34   :  { %704 = vst [vmem:[%s1992_s3 + $0x150] sm:$0xff] %v576_v26  ;;  %v324_v44 = vmul.f32 %v1143_v1, %v896_v38  ;;  %v325_v45 = vmul.f32 %v1143_v1, %v897_v39  ;;  %v904_v46 = vunpack.c.l.bf16 %v1076_v35  ;;  %v905_v47 = vunpack.c.h.bf16 %v1076_v35  ;;  %v1082_v35 = vld [vmem:[%s1989_s0 + $0x108] sm:$0xff]  }
  0x35   :  { %705 = vst [vmem:[%s1992_s3 + $0x158] sm:$0xff] %v577_v27  ;;  %v454_v48 = vadd.f32 %v1148_v3, %v322_v40  ;;  %v455_v49 = vadd.f32 %v1148_v3, %v323_v41  ;;  %v326_v50 = vmul.f32 %v1143_v1, %v900_v42  ;;  %v327_v51 = vmul.f32 %v1143_v1, %v901_v43  ;;  %v1083_v40 = vld [vmem:[%s1989_s0 + $0x110] sm:$0xff]  }
  0x36   :  { %706 = vst [vmem:[%s1992_s3 + $0x160] sm:$0xff] %v578_v31  ;;  %v456_v52 = vadd.f32 %v1148_v3, %v324_v44  ;;  %v457_v53 = vadd.f32 %v1148_v3, %v325_v45  ;;  %v328_v54 = vmul.f32 %v1143_v1, %v904_v46  ;;  %v329_v55 = vmul.f32 %v1143_v1, %v905_v47  ;;  %v1084_v45 = vld [vmem:[%s1989_s0 + $0x118] sm:$0xff]  }
  0x37   :  { %707 = vst [vmem:[%s1992_s3 + $0x168] sm:$0xff] %v579_v32  ;;  %v582_v57 = vmax.f32 %v454_v48, 0.0  ;;  %v583_v58 = vmax.f32 %v455_v49, 0.0  ;;  %v458_v59 = vadd.f32 %v1148_v3, %v326_v50  ;;  %v459_v60 = vadd.f32 %v1148_v3, %v327_v51 }
  0x38   :  { %708 = vst [vmem:[%s1992_s3 + $0x170] sm:$0xff] %v580_v36  ;;  %v584_v62 = vmax.f32 %v456_v52, 0.0  ;;  %v585_v63 = vmax.f32 %v457_v53, 0.0  ;;  %v460_v0 = vadd.f32 %v1148_v3, %v328_v54  ;;  %v461_v2 = vadd.f32 %v1148_v3, %v329_v55 }
  0x39   :  { %709 = vst [vmem:[%s1992_s3 + $0x178] sm:$0xff] %v581_v37  ;;  %v586_v5 = vmax.f32 %v458_v59, 0.0  ;;  %v587_v6 = vmax.f32 %v459_v60, 0.0  ;;  %v908_v7 = vunpack.c.l.bf16 %v1077_v56  ;;  %v909_v8 = vunpack.c.h.bf16 %v1077_v56 }
  0x3a   :  { %710 = vst [vmem:[%s1992_s3 + $0x180] sm:$0xff] %v582_v57  ;;  %v588_v10 = vmax.f32 %v460_v0, 0.0  ;;  %v589_v11 = vmax.f32 %v461_v2, 0.0  ;;  %v912_v12 = vunpack.c.l.bf16 %v1078_v61  ;;  %v913_v13 = vunpack.c.h.bf16 %v1078_v61 }
  0x3b   :  { %711 = vst [vmem:[%s1992_s3 + $0x188] sm:$0xff] %v583_v58  ;;  %v330_v14 = vmul.f32 %v1143_v1, %v908_v7  ;;  %v331_v15 = vmul.f32 %v1143_v1, %v909_v8  ;;  %v916_v16 = vunpack.c.l.bf16 %v1079_v4  ;;  %v917_v17 = vunpack.c.h.bf16 %v1079_v4  ;;  %v1085_v4 = vld [vmem:[%s1989_s0 + $0x120] sm:$0xff]  }
  0x3c   :  { %712 = vst [vmem:[%s1992_s3 + $0x190] sm:$0xff] %v584_v62  ;;  %v332_v18 = vmul.f32 %v1143_v1, %v912_v12  ;;  %v333_v19 = vmul.f32 %v1143_v1, %v913_v13  ;;  %v920_v20 = vunpack.c.l.bf16 %v1080_v9  ;;  %v921_v21 = vunpack.c.h.bf16 %v1080_v9  ;;  %v1086_v9 = vld [vmem:[%s1989_s0 + $0x128] sm:$0xff]  }
  0x3d   :  { %713 = vst [vmem:[%s1992_s3 + $0x198] sm:$0xff] %v585_v63  ;;  %v462_v22 = vadd.f32 %v1148_v3, %v330_v14  ;;  %v463_v23 = vadd.f32 %v1148_v3, %v331_v15  ;;  %v334_v24 = vmul.f32 %v1143_v1, %v916_v16  ;;  %v335_v25 = vmul.f32 %v1143_v1, %v917_v17  ;;  %v1087_v14 = vld [vmem:[%s1989_s0 + $0x130] sm:$0xff]  }
  0x3e   :  { %714 = vst [vmem:[%s1992_s3 + $0x1a0] sm:$0xff] %v586_v5  ;;  %v464_v26 = vadd.f32 %v1148_v3, %v332_v18  ;;  %v465_v27 = vadd.f32 %v1148_v3, %v333_v19  ;;  %v336_v28 = vmul.f32 %v1143_v1, %v920_v20  ;;  %v337_v29 = vmul.f32 %v1143_v1, %v921_v21  ;;  %v1088_v19 = vld [vmem:[%s1989_s0 + $0x138] sm:$0xff]  }
  0x3f   :  { %715 = vst [vmem:[%s1992_s3 + $0x1a8] sm:$0xff] %v587_v6  ;;  %v590_v31 = vmax.f32 %v462_v22, 0.0  ;;  %v591_v32 = vmax.f32 %v463_v23, 0.0  ;;  %v466_v33 = vadd.f32 %v1148_v3, %v334_v24  ;;  %v467_v34 = vadd.f32 %v1148_v3, %v335_v25 }
  0x40   :  { %716 = vst [vmem:[%s1992_s3 + $0x1b0] sm:$0xff] %v588_v10  ;;  %v592_v36 = vmax.f32 %v464_v26, 0.0  ;;  %v593_v37 = vmax.f32 %v465_v27, 0.0  ;;  %v468_v38 = vadd.f32 %v1148_v3, %v336_v28  ;;  %v469_v39 = vadd.f32 %v1148_v3, %v337_v29 }
  0x41   :  { %717 = vst [vmem:[%s1992_s3 + $0x1b8] sm:$0xff] %v589_v11  ;;  %v594_v41 = vmax.f32 %v466_v33, 0.0  ;;  %v595_v42 = vmax.f32 %v467_v34, 0.0  ;;  %v924_v43 = vunpack.c.l.bf16 %v1081_v30  ;;  %v925_v44 = vunpack.c.h.bf16 %v1081_v30 }
  0x42   :  { %718 = vst [vmem:[%s1992_s3 + $0x1c0] sm:$0xff] %v590_v31  ;;  %v596_v46 = vmax.f32 %v468_v38, 0.0  ;;  %v597_v47 = vmax.f32 %v469_v39, 0.0  ;;  %v928_v48 = vunpack.c.l.bf16 %v1082_v35  ;;  %v929_v49 = vunpack.c.h.bf16 %v1082_v35 }
  0x43   :  { %719 = vst [vmem:[%s1992_s3 + $0x1c8] sm:$0xff] %v591_v32  ;;  %v338_v50 = vmul.f32 %v1143_v1, %v924_v43  ;;  %v339_v51 = vmul.f32 %v1143_v1, %v925_v44  ;;  %v932_v52 = vunpack.c.l.bf16 %v1083_v40  ;;  %v933_v53 = vunpack.c.h.bf16 %v1083_v40  ;;  %v1089_v40 = vld [vmem:[%s1989_s0 + $0x140] sm:$0xff]  }
  0x44   :  { %720 = vst [vmem:[%s1992_s3 + $0x1d0] sm:$0xff] %v592_v36  ;;  %v340_v54 = vmul.f32 %v1143_v1, %v928_v48  ;;  %v341_v55 = vmul.f32 %v1143_v1, %v929_v49  ;;  %v936_v56 = vunpack.c.l.bf16 %v1084_v45  ;;  %v937_v57 = vunpack.c.h.bf16 %v1084_v45  ;;  %v1090_v45 = vld [vmem:[%s1989_s0 + $0x148] sm:$0xff]  }
  0x45   :  { %721 = vst [vmem:[%s1992_s3 + $0x1d8] sm:$0xff] %v593_v37  ;;  %v470_v58 = vadd.f32 %v1148_v3, %v338_v50  ;;  %v471_v59 = vadd.f32 %v1148_v3, %v339_v51  ;;  %v342_v60 = vmul.f32 %v1143_v1, %v932_v52  ;;  %v343_v61 = vmul.f32 %v1143_v1, %v933_v53  ;;  %v1091_v50 = vld [vmem:[%s1989_s0 + $0x150] sm:$0xff]  }
  0x46   :  { %722 = vst [vmem:[%s1992_s3 + $0x1e0] sm:$0xff] %v594_v41  ;;  %v472_v62 = vadd.f32 %v1148_v3, %v340_v54  ;;  %v473_v63 = vadd.f32 %v1148_v3, %v341_v55  ;;  %v344_v0 = vmul.f32 %v1143_v1, %v936_v56  ;;  %v345_v2 = vmul.f32 %v1143_v1, %v937_v57  ;;  %v1092_v55 = vld [vmem:[%s1989_s0 + $0x158] sm:$0xff]  }
  0x47   :  { %723 = vst [vmem:[%s1992_s3 + $0x1e8] sm:$0xff] %v595_v42  ;;  %v598_v5 = vmax.f32 %v470_v58, 0.0  ;;  %v599_v6 = vmax.f32 %v471_v59, 0.0  ;;  %v474_v7 = vadd.f32 %v1148_v3, %v342_v60  ;;  %v475_v8 = vadd.f32 %v1148_v3, %v343_v61 }
  0x48   :  { %724 = vst [vmem:[%s1992_s3 + $0x1f0] sm:$0xff] %v596_v46  ;;  %v600_v10 = vmax.f32 %v472_v62, 0.0  ;;  %v601_v11 = vmax.f32 %v473_v63, 0.0  ;;  %v476_v12 = vadd.f32 %v1148_v3, %v344_v0  ;;  %v477_v13 = vadd.f32 %v1148_v3, %v345_v2 }
  0x49   :  { %725 = vst [vmem:[%s1992_s3 + $0x1f8] sm:$0xff] %v597_v47  ;;  %v602_v15 = vmax.f32 %v474_v7, 0.0  ;;  %v603_v16 = vmax.f32 %v475_v8, 0.0  ;;  %v940_v17 = vunpack.c.l.bf16 %v1085_v4  ;;  %v941_v18 = vunpack.c.h.bf16 %v1085_v4 }
  0x4a   :  { %726 = vst [vmem:[%s1992_s3 + $0x200] sm:$0xff] %v598_v5  ;;  %v604_v20 = vmax.f32 %v476_v12, 0.0  ;;  %v605_v21 = vmax.f32 %v477_v13, 0.0  ;;  %v944_v22 = vunpack.c.l.bf16 %v1086_v9  ;;  %v945_v23 = vunpack.c.h.bf16 %v1086_v9 }
  0x4b   :  { %727 = vst [vmem:[%s1992_s3 + $0x208] sm:$0xff] %v599_v6  ;;  %v346_v24 = vmul.f32 %v1143_v1, %v940_v17  ;;  %v347_v25 = vmul.f32 %v1143_v1, %v941_v18  ;;  %v948_v26 = vunpack.c.l.bf16 %v1087_v14  ;;  %v949_v27 = vunpack.c.h.bf16 %v1087_v14  ;;  %v1093_v14 = vld [vmem:[%s1989_s0 + $0x160] sm:$0xff]  }
  0x4c   :  { %728 = vst [vmem:[%s1992_s3 + $0x210] sm:$0xff] %v600_v10  ;;  %v348_v28 = vmul.f32 %v1143_v1, %v944_v22  ;;  %v349_v29 = vmul.f32 %v1143_v1, %v945_v23  ;;  %v952_v30 = vunpack.c.l.bf16 %v1088_v19  ;;  %v953_v31 = vunpack.c.h.bf16 %v1088_v19  ;;  %v1094_v19 = vld [vmem:[%s1989_s0 + $0x168] sm:$0xff]  }
  0x4d   :  { %729 = vst [vmem:[%s1992_s3 + $0x218] sm:$0xff] %v601_v11  ;;  %v478_v32 = vadd.f32 %v1148_v3, %v346_v24  ;;  %v479_v33 = vadd.f32 %v1148_v3, %v347_v25  ;;  %v350_v34 = vmul.f32 %v1143_v1, %v948_v26  ;;  %v351_v35 = vmul.f32 %v1143_v1, %v949_v27  ;;  %v1095_v24 = vld [vmem:[%s1989_s0 + $0x170] sm:$0xff]  }
  0x4e   :  { %730 = vst [vmem:[%s1992_s3 + $0x220] sm:$0xff] %v602_v15  ;;  %v480_v36 = vadd.f32 %v1148_v3, %v348_v28  ;;  %v481_v37 = vadd.f32 %v1148_v3, %v349_v29  ;;  %v352_v38 = vmul.f32 %v1143_v1, %v952_v30  ;;  %v353_v39 = vmul.f32 %v1143_v1, %v953_v31  ;;  %v1096_v29 = vld [vmem:[%s1989_s0 + $0x178] sm:$0xff]  }
  0x4f   :  { %731 = vst [vmem:[%s1992_s3 + $0x228] sm:$0xff] %v603_v16  ;;  %v606_v41 = vmax.f32 %v478_v32, 0.0  ;;  %v607_v42 = vmax.f32 %v479_v33, 0.0  ;;  %v482_v43 = vadd.f32 %v1148_v3, %v350_v34  ;;  %v483_v44 = vadd.f32 %v1148_v3, %v351_v35 }
  0x50   :  { %732 = vst [vmem:[%s1992_s3 + $0x230] sm:$0xff] %v604_v20  ;;  %v608_v46 = vmax.f32 %v480_v36, 0.0  ;;  %v609_v47 = vmax.f32 %v481_v37, 0.0  ;;  %v484_v48 = vadd.f32 %v1148_v3, %v352_v38  ;;  %v485_v49 = vadd.f32 %v1148_v3, %v353_v39 }
  0x51   :  { %733 = vst [vmem:[%s1992_s3 + $0x238] sm:$0xff] %v605_v21  ;;  %v610_v51 = vmax.f32 %v482_v43, 0.0  ;;  %v611_v52 = vmax.f32 %v483_v44, 0.0  ;;  %v956_v53 = vunpack.c.l.bf16 %v1089_v40  ;;  %v957_v54 = vunpack.c.h.bf16 %v1089_v40 }
  0x52   :  { %734 = vst [vmem:[%s1992_s3 + $0x240] sm:$0xff] %v606_v41  ;;  %v612_v56 = vmax.f32 %v484_v48, 0.0  ;;  %v613_v57 = vmax.f32 %v485_v49, 0.0  ;;  %v960_v58 = vunpack.c.l.bf16 %v1090_v45  ;;  %v961_v59 = vunpack.c.h.bf16 %v1090_v45 }
  0x53   :  { %735 = vst [vmem:[%s1992_s3 + $0x248] sm:$0xff] %v607_v42  ;;  %v354_v60 = vmul.f32 %v1143_v1, %v956_v53  ;;  %v355_v61 = vmul.f32 %v1143_v1, %v957_v54  ;;  %v964_v62 = vunpack.c.l.bf16 %v1091_v50  ;;  %v965_v63 = vunpack.c.h.bf16 %v1091_v50  ;;  %v1097_v50 = vld [vmem:[%s1989_s0 + $0x180] sm:$0xff]  }
  0x54   :  { %736 = vst [vmem:[%s1992_s3 + $0x250] sm:$0xff] %v608_v46  ;;  %v356_v0 = vmul.f32 %v1143_v1, %v960_v58  ;;  %v357_v2 = vmul.f32 %v1143_v1, %v961_v59  ;;  %v968_v4 = vunpack.c.l.bf16 %v1092_v55  ;;  %v969_v5 = vunpack.c.h.bf16 %v1092_v55  ;;  %v1098_v55 = vld [vmem:[%s1989_s0 + $0x188] sm:$0xff]  }
  0x55   :  { %737 = vst [vmem:[%s1992_s3 + $0x258] sm:$0xff] %v609_v47  ;;  %v486_v6 = vadd.f32 %v1148_v3, %v354_v60  ;;  %v487_v7 = vadd.f32 %v1148_v3, %v355_v61  ;;  %v358_v8 = vmul.f32 %v1143_v1, %v964_v62  ;;  %v359_v9 = vmul.f32 %v1143_v1, %v965_v63 }
  0x56   :  { %738 = vst [vmem:[%s1992_s3 + $0x260] sm:$0xff] %v610_v51  ;;  %v488_v10 = vadd.f32 %v1148_v3, %v356_v0  ;;  %v489_v11 = vadd.f32 %v1148_v3, %v357_v2  ;;  %v360_v12 = vmul.f32 %v1143_v1, %v968_v4  ;;  %v361_v13 = vmul.f32 %v1143_v1, %v969_v5  ;;  %v1100_v0 = vld [vmem:[%s1989_s0 + $0x198] sm:$0xff]  }
  0x57   :  { %739 = vst [vmem:[%s1992_s3 + $0x268] sm:$0xff] %v611_v52  ;;  %v614_v15 = vmax.f32 %v486_v6, 0.0  ;;  %v615_v16 = vmax.f32 %v487_v7, 0.0  ;;  %v490_v17 = vadd.f32 %v1148_v3, %v358_v8  ;;  %v491_v18 = vadd.f32 %v1148_v3, %v359_v9  ;;  %v1776_v7 = vld [vmem:[%s1990_s1] ss:$0 sm:$0xff] }
  0x58   :  { %740 = vst [vmem:[%s1992_s3 + $0x270] sm:$0xff] %v612_v56  ;;  %v616_v20 = vmax.f32 %v488_v10, 0.0  ;;  %v617_v21 = vmax.f32 %v489_v11, 0.0  ;;  %v492_v22 = vadd.f32 %v1148_v3, %v360_v12  ;;  %v493_v23 = vadd.f32 %v1148_v3, %v361_v13 }
  0x59   :  { %741 = vst [vmem:[%s1992_s3 + $0x278] sm:$0xff] %v613_v57  ;;  %v618_v25 = vmax.f32 %v490_v17, 0.0  ;;  %v619_v26 = vmax.f32 %v491_v18, 0.0  ;;  %v972_v27 = vunpack.c.l.bf16 %v1093_v14  ;;  %v973_v28 = vunpack.c.h.bf16 %v1093_v14  ;;  %v1754_v57 = vld [vmem:[%s1991_s2] ss:$0 sm:$0xff] }
  0x5a   :  { %742 = vst [vmem:[%s1992_s3 + $0x280] sm:$0xff] %v614_v15  ;;  %v620_v30 = vmax.f32 %v492_v22, 0.0  ;;  %v621_v31 = vmax.f32 %v493_v23, 0.0  ;;  %v976_v32 = vunpack.c.l.bf16 %v1094_v19  ;;  %v977_v33 = vunpack.c.h.bf16 %v1094_v19 }
  0x5b   :  { %743 = vst [vmem:[%s1992_s3 + $0x288] sm:$0xff] %v615_v16  ;;  %v362_v34 = vmul.f32 %v1143_v1, %v972_v27  ;;  %v363_v35 = vmul.f32 %v1143_v1, %v973_v28  ;;  %v980_v36 = vunpack.c.l.bf16 %v1095_v24  ;;  %v981_v37 = vunpack.c.h.bf16 %v1095_v24  ;;  %v1101_v24 = vld [vmem:[%s1989_s0 + $0x1a0] sm:$0xff]  }
  0x5c   :  { %744 = vst [vmem:[%s1992_s3 + $0x290] sm:$0xff] %v616_v20  ;;  %v364_v38 = vmul.f32 %v1143_v1, %v976_v32  ;;  %v365_v39 = vmul.f32 %v1143_v1, %v977_v33  ;;  %v984_v40 = vunpack.c.l.bf16 %v1096_v29  ;;  %v985_v41 = vunpack.c.h.bf16 %v1096_v29  ;;  %v1102_v29 = vld [vmem:[%s1989_s0 + $0x1a8] sm:$0xff]  }
  0x5d   :  { %745 = vst [vmem:[%s1992_s3 + $0x298] sm:$0xff] %v617_v21  ;;  %v494_v42 = vadd.f32 %v1148_v3, %v362_v34  ;;  %v495_v43 = vadd.f32 %v1148_v3, %v363_v35  ;;  %v366_v44 = vmul.f32 %v1143_v1, %v980_v36  ;;  %v367_v45 = vmul.f32 %v1143_v1, %v981_v37  ;;  %v1103_v34 = vld [vmem:[%s1989_s0 + $0x1b0] sm:$0xff]  }
  0x5e   :  { %746 = vst [vmem:[%s1992_s3 + $0x2a0] sm:$0xff] %v618_v25  ;;  %v496_v46 = vadd.f32 %v1148_v3, %v364_v38  ;;  %v497_v47 = vadd.f32 %v1148_v3, %v365_v39  ;;  %v368_v48 = vmul.f32 %v1143_v1, %v984_v40  ;;  %v369_v49 = vmul.f32 %v1143_v1, %v985_v41  ;;  %v1104_v39 = vld [vmem:[%s1989_s0 + $0x1b8] sm:$0xff]  }
  0x5f   :  { %747 = vst [vmem:[%s1992_s3 + $0x2a8] sm:$0xff] %v619_v26  ;;  %v622_v51 = vmax.f32 %v494_v42, 0.0  ;;  %v623_v52 = vmax.f32 %v495_v43, 0.0  ;;  %v498_v53 = vadd.f32 %v1148_v3, %v366_v44  ;;  %v499_v54 = vadd.f32 %v1148_v3, %v367_v45  ;;  %v1099_v3 = vld [vmem:[%s1989_s0 + $0x190] sm:$0xff]  }
  0x60   :  { %748 = vst [vmem:[%s1992_s3 + $0x2b0] sm:$0xff] %v620_v30  ;;  %v624_v1 = vmax.f32 %v496_v46, 0.0  ;;  %v625_v56 = vmax.f32 %v497_v47, 0.0  ;;  %v500_v58 = vadd.f32 %v1754_v57, %v368_v48  ;;  %v501_v59 = vadd.f32 %v1754_v57, %v369_v49 }
  0x61   :  { %749 = vst [vmem:[%s1992_s3 + $0x2b8] sm:$0xff] %v621_v31  ;;  %v626_v60 = vmax.f32 %v498_v53, 0.0  ;;  %v627_v61 = vmax.f32 %v499_v54, 0.0  ;;  %v988_v62 = vunpack.c.l.bf16 %v1097_v50  ;;  %v989_v63 = vunpack.c.h.bf16 %v1097_v50 }
  0x62   :  { %750 = vst [vmem:[%s1992_s3 + $0x2c0] sm:$0xff] %v622_v51  ;;  %v628_v2 = vmax.f32 %v500_v58, 0.0  ;;  %v629_v4 = vmax.f32 %v501_v59, 0.0  ;;  %v992_v5 = vunpack.c.l.bf16 %v1098_v55  ;;  %v993_v6 = vunpack.c.h.bf16 %v1098_v55 }
  0x63   :  { %751 = vst [vmem:[%s1992_s3 + $0x2c8] sm:$0xff] %v623_v52  ;;  %v370_v8 = vmul.f32 %v1776_v7, %v988_v62  ;;  %v371_v9 = vmul.f32 %v1776_v7, %v989_v63  ;;  %v996_v10 = vunpack.c.l.bf16 %v1099_v3  ;;  %v997_v11 = vunpack.c.h.bf16 %v1099_v3  ;;  %v1105_v3 = vld [vmem:[%s1989_s0 + $0x1c0] sm:$0xff]  }
  0x64   :  { %752 = vst [vmem:[%s1992_s3 + $0x2d0] sm:$0xff] %v624_v1  ;;  %v372_v12 = vmul.f32 %v1776_v7, %v992_v5  ;;  %v373_v13 = vmul.f32 %v1776_v7, %v993_v6  ;;  %v1000_v14 = vunpack.c.l.bf16 %v1100_v0  ;;  %v1001_v15 = vunpack.c.h.bf16 %v1100_v0  ;;  %v1106_v0 = vld [vmem:[%s1989_s0 + $0x1c8] sm:$0xff]  }
  0x65   :  { %753 = vst [vmem:[%s1992_s3 + $0x2d8] sm:$0xff] %v625_v56  ;;  %v502_v16 = vadd.f32 %v1754_v57, %v370_v8  ;;  %v503_v17 = vadd.f32 %v1754_v57, %v371_v9  ;;  %v374_v18 = vmul.f32 %v1776_v7, %v996_v10  ;;  %v375_v19 = vmul.f32 %v1776_v7, %v997_v11  ;;  %v1107_v8 = vld [vmem:[%s1989_s0 + $0x1d0] sm:$0xff]  }
  0x66   :  { %754 = vst [vmem:[%s1992_s3 + $0x2e0] sm:$0xff] %v626_v60  ;;  %v504_v20 = vadd.f32 %v1754_v57, %v372_v12  ;;  %v505_v21 = vadd.f32 %v1754_v57, %v373_v13  ;;  %v376_v22 = vmul.f32 %v1776_v7, %v1000_v14  ;;  %v377_v23 = vmul.f32 %v1776_v7, %v1001_v15  ;;  %v1108_v13 = vld [vmem:[%s1989_s0 + $0x1d8] sm:$0xff]  }
  0x67   :  { %755 = vst [vmem:[%s1992_s3 + $0x2e8] sm:$0xff] %v627_v61  ;;  %v630_v25 = vmax.f32 %v502_v16, 0.0  ;;  %v631_v26 = vmax.f32 %v503_v17, 0.0  ;;  %v506_v27 = vadd.f32 %v1754_v57, %v374_v18  ;;  %v507_v28 = vadd.f32 %v1754_v57, %v375_v19 }
  0x68   :  { %756 = vst [vmem:[%s1992_s3 + $0x2f0] sm:$0xff] %v628_v2  ;;  %v632_v30 = vmax.f32 %v504_v20, 0.0  ;;  %v633_v31 = vmax.f32 %v505_v21, 0.0  ;;  %v508_v32 = vadd.f32 %v1754_v57, %v376_v22  ;;  %v509_v33 = vadd.f32 %v1754_v57, %v377_v23 }
  0x69   :  { %757 = vst [vmem:[%s1992_s3 + $0x2f8] sm:$0xff] %v629_v4  ;;  %v634_v35 = vmax.f32 %v506_v27, 0.0  ;;  %v635_v36 = vmax.f32 %v507_v28, 0.0  ;;  %v1004_v37 = vunpack.c.l.bf16 %v1101_v24  ;;  %v1005_v38 = vunpack.c.h.bf16 %v1101_v24 }
  0x6a   :  { %758 = vst [vmem:[%s1992_s3 + $0x300] sm:$0xff] %v630_v25  ;;  %v636_v40 = vmax.f32 %v508_v32, 0.0  ;;  %v637_v41 = vmax.f32 %v509_v33, 0.0  ;;  %v1008_v42 = vunpack.c.l.bf16 %v1102_v29  ;;  %v1009_v43 = vunpack.c.h.bf16 %v1102_v29 }
  0x6b   :  { %759 = vst [vmem:[%s1992_s3 + $0x308] sm:$0xff] %v631_v26  ;;  %v378_v44 = vmul.f32 %v1776_v7, %v1004_v37  ;;  %v379_v45 = vmul.f32 %v1776_v7, %v1005_v38  ;;  %v1012_v46 = vunpack.c.l.bf16 %v1103_v34  ;;  %v1013_v47 = vunpack.c.h.bf16 %v1103_v34  ;;  %v1109_v34 = vld [vmem:[%s1989_s0 + $0x1e0] sm:$0xff]  }
  0x6c   :  { %760 = vst [vmem:[%s1992_s3 + $0x310] sm:$0xff] %v632_v30  ;;  %v380_v48 = vmul.f32 %v1776_v7, %v1008_v42  ;;  %v381_v49 = vmul.f32 %v1776_v7, %v1009_v43  ;;  %v1016_v50 = vunpack.c.l.bf16 %v1104_v39  ;;  %v1017_v51 = vunpack.c.h.bf16 %v1104_v39  ;;  %v1110_v39 = vld [vmem:[%s1989_s0 + $0x1e8] sm:$0xff]  }
  0x6d   :  { %761 = vst [vmem:[%s1992_s3 + $0x318] sm:$0xff] %v633_v31  ;;  %v510_v52 = vadd.f32 %v1754_v57, %v378_v44  ;;  %v511_v53 = vadd.f32 %v1754_v57, %v379_v45  ;;  %v382_v54 = vmul.f32 %v1776_v7, %v1012_v46  ;;  %v383_v55 = vmul.f32 %v1776_v7, %v1013_v47  ;;  %v1111_v44 = vld [vmem:[%s1989_s0 + $0x1f0] sm:$0xff]  }
  0x6e   :  { %762 = vst [vmem:[%s1992_s3 + $0x320] sm:$0xff] %v634_v35  ;;  %v512_v1 = vadd.f32 %v1754_v57, %v380_v48  ;;  %v513_v56 = vadd.f32 %v1754_v57, %v381_v49  ;;  %v384_v58 = vmul.f32 %v1776_v7, %v1016_v50  ;;  %v385_v59 = vmul.f32 %v1776_v7, %v1017_v51  ;;  %v1112_v49 = vld [vmem:[%s1989_s0 + $0x1f8] sm:$0xff]  }
  0x6f   :  { %763 = vst [vmem:[%s1992_s3 + $0x328] sm:$0xff] %v635_v36  ;;  %v638_v60 = vmax.f32 %v510_v52, 0.0  ;;  %v639_v61 = vmax.f32 %v511_v53, 0.0  ;;  %v514_v62 = vadd.f32 %v1754_v57, %v382_v54  ;;  %v515_v63 = vadd.f32 %v1754_v57, %v383_v55 }
  0x70   :  { %764 = vst [vmem:[%s1992_s3 + $0x330] sm:$0xff] %v636_v40  ;;  %v640_v2 = vmax.f32 %v512_v1, 0.0  ;;  %v641_v4 = vmax.f32 %v513_v56, 0.0  ;;  %v516_v5 = vadd.f32 %v1754_v57, %v384_v58  ;;  %v517_v6 = vadd.f32 %v1754_v57, %v385_v59 }
  0x71   :  { %765 = vst [vmem:[%s1992_s3 + $0x338] sm:$0xff] %v637_v41  ;;  %v642_v9 = vmax.f32 %v514_v62, 0.0  ;;  %v643_v10 = vmax.f32 %v515_v63, 0.0  ;;  %v1020_v11 = vunpack.c.l.bf16 %v1105_v3  ;;  %v1021_v12 = vunpack.c.h.bf16 %v1105_v3 }
  0x72   :  { %766 = vst [vmem:[%s1992_s3 + $0x340] sm:$0xff] %v638_v60  ;;  %v644_v14 = vmax.f32 %v516_v5, 0.0  ;;  %v645_v15 = vmax.f32 %v517_v6, 0.0  ;;  %v1024_v16 = vunpack.c.l.bf16 %v1106_v0  ;;  %v1025_v17 = vunpack.c.h.bf16 %v1106_v0 }
  0x73   :  { %767 = vst [vmem:[%s1992_s3 + $0x348] sm:$0xff] %v639_v61  ;;  %v386_v18 = vmul.f32 %v1776_v7, %v1020_v11  ;;  %v387_v19 = vmul.f32 %v1776_v7, %v1021_v12  ;;  %v1028_v20 = vunpack.c.l.bf16 %v1107_v8  ;;  %v1029_v21 = vunpack.c.h.bf16 %v1107_v8 }
  0x74   :  { %768 = vst [vmem:[%s1992_s3 + $0x350] sm:$0xff] %v640_v2  ;;  %v388_v22 = vmul.f32 %v1776_v7, %v1024_v16  ;;  %v389_v23 = vmul.f32 %v1776_v7, %v1025_v17  ;;  %v1032_v24 = vunpack.c.l.bf16 %v1108_v13  ;;  %v1033_v25 = vunpack.c.h.bf16 %v1108_v13 }
  0x75   :  { %769 = vst [vmem:[%s1992_s3 + $0x358] sm:$0xff] %v641_v4  ;;  %v518_v26 = vadd.f32 %v1754_v57, %v386_v18  ;;  %v519_v27 = vadd.f32 %v1754_v57, %v387_v19  ;;  %v390_v28 = vmul.f32 %v1776_v7, %v1028_v20  ;;  %v391_v29 = vmul.f32 %v1776_v7, %v1029_v21 }
  0x76   :  { %770 = vst [vmem:[%s1992_s3 + $0x360] sm:$0xff] %v642_v9  ;;  %v520_v30 = vadd.f32 %v1754_v57, %v388_v22  ;;  %v521_v31 = vadd.f32 %v1754_v57, %v389_v23  ;;  %v392_v32 = vmul.f32 %v1776_v7, %v1032_v24  ;;  %v393_v33 = vmul.f32 %v1776_v7, %v1033_v25 }
  0x77   :  { %771 = vst [vmem:[%s1992_s3 + $0x368] sm:$0xff] %v643_v10  ;;  %v646_v35 = vmax.f32 %v518_v26, 0.0  ;;  %v647_v36 = vmax.f32 %v519_v27, 0.0  ;;  %v522_v37 = vadd.f32 %v1754_v57, %v390_v28  ;;  %v523_v38 = vadd.f32 %v1754_v57, %v391_v29 }
  0x78   :  { %772 = vst [vmem:[%s1992_s3 + $0x370] sm:$0xff] %v644_v14  ;;  %v648_v40 = vmax.f32 %v520_v30, 0.0  ;;  %v649_v41 = vmax.f32 %v521_v31, 0.0  ;;  %v524_v42 = vadd.f32 %v1754_v57, %v392_v32  ;;  %v525_v43 = vadd.f32 %v1754_v57, %v393_v33 }
  0x79   :  { %773 = vst [vmem:[%s1992_s3 + $0x378] sm:$0xff] %v645_v15  ;;  %v650_v45 = vmax.f32 %v522_v37, 0.0  ;;  %v651_v46 = vmax.f32 %v523_v38, 0.0  ;;  %v1036_v47 = vunpack.c.l.bf16 %v1109_v34  ;;  %v1037_v48 = vunpack.c.h.bf16 %v1109_v34 }
  0x7a   :  { %774 = vst [vmem:[%s1992_s3 + $0x380] sm:$0xff] %v646_v35  ;;  %v652_v50 = vmax.f32 %v524_v42, 0.0  ;;  %v653_v51 = vmax.f32 %v525_v43, 0.0  ;;  %v1040_v52 = vunpack.c.l.bf16 %v1110_v39  ;;  %v1041_v53 = vunpack.c.h.bf16 %v1110_v39 }
  0x7b   :  { %775 = vst [vmem:[%s1992_s3 + $0x388] sm:$0xff] %v647_v36  ;;  %v394_v54 = vmul.f32 %v1776_v7, %v1036_v47  ;;  %v395_v55 = vmul.f32 %v1776_v7, %v1037_v48  ;;  %v1044_v1 = vunpack.c.l.bf16 %v1111_v44  ;;  %v1045_v56 = vunpack.c.h.bf16 %v1111_v44 }
  0x7c   :  { %776 = vst [vmem:[%s1992_s3 + $0x390] sm:$0xff] %v648_v40  ;;  %v396_v58 = vmul.f32 %v1776_v7, %v1040_v52  ;;  %v397_v59 = vmul.f32 %v1776_v7, %v1041_v53  ;;  %v1048_v3 = vunpack.c.l.bf16 %v1112_v49  ;;  %v1049_v60 = vunpack.c.h.bf16 %v1112_v49 }
  0x7d   :  { %777 = vst [vmem:[%s1992_s3 + $0x398] sm:$0xff] %v649_v41  ;;  %v526_v61 = vadd.f32 %v1754_v57, %v394_v54  ;;  %v527_v62 = vadd.f32 %v1754_v57, %v395_v55  ;;  %v398_v63 = vmul.f32 %v1776_v7, %v1044_v1  ;;  %v399_v0 = vmul.f32 %v1776_v7, %v1045_v56 }
  0x7e   :  { %778 = vst [vmem:[%s1992_s3 + $0x3a0] sm:$0xff] %v650_v45  ;;  %v528_v2 = vadd.f32 %v1754_v57, %v396_v58  ;;  %v529_v4 = vadd.f32 %v1754_v57, %v397_v59  ;;  %v400_v5 = vmul.f32 %v1776_v7, %v1048_v3  ;;  %v401_v6 = vmul.f32 %v1776_v7, %v1049_v60 }
  0x7f   :  { %779 = vst [vmem:[%s1992_s3 + $0x3a8] sm:$0xff] %v651_v46  ;;  %v654_v8 = vmax.f32 %v526_v61, 0.0  ;;  %v655_v9 = vmax.f32 %v527_v62, 0.0  ;;  %v530_v10 = vadd.f32 %v1754_v57, %v398_v63  ;;  %v531_v11 = vadd.f32 %v1754_v57, %v399_v0 }
  0x80   :  { %780 = vst [vmem:[%s1992_s3 + $0x3b0] sm:$0xff] %v652_v50  ;;  %v656_v12 = vmax.f32 %v528_v2, 0.0  ;;  %v657_v13 = vmax.f32 %v529_v4, 0.0  ;;  %v532_v14 = vadd.f32 %v1754_v57, %v400_v5  ;;  %v533_v7 = vadd.f32 %v1754_v57, %v401_v6 }
  0x81   :  { %781 = vst [vmem:[%s1992_s3 + $0x3b8] sm:$0xff] %v653_v51  ;;  %v658_v15 = vmax.f32 %v530_v10, 0.0  ;;  %v659_v16 = vmax.f32 %v531_v11, 0.0 }
  0x82   :  { %782 = vst [vmem:[%s1992_s3 + $0x3c0] sm:$0xff] %v654_v8  ;;  %v660_v17 = vmax.f32 %v532_v14, 0.0  ;;  %v661_v57 = vmax.f32 %v533_v7, 0.0 }
  0x83   :  { %783 = vst [vmem:[%s1992_s3 + $0x3c8] sm:$0xff] %v655_v9 }
  0x84   :  { %784 = vst [vmem:[%s1992_s3 + $0x3d0] sm:$0xff] %v656_v12 }
  0x85   :  { %785 = vst [vmem:[%s1992_s3 + $0x3d8] sm:$0xff] %v657_v13 }
  0x86   :  { %786 = vst [vmem:[%s1992_s3 + $0x3e0] sm:$0xff] %v658_v15 }
  0x87   :  { %787 = vst [vmem:[%s1992_s3 + $0x3e8] sm:$0xff] %v659_v16 }
  0x88   :  { %788 = vst [vmem:[%s1992_s3 + $0x3f0] sm:$0xff] %v660_v17 }
  0x89   :  { %789 = vst [vmem:[%s1992_s3 + $0x3f8] sm:$0xff] %v661_v57 }

</bundles_post_ra>
